<compile_context>
chip_gen: v5e
topology: v5e:2x2
jax: 0.10.0
libtpu: 0.0.40
codegen_flags: <defaults>
</compile_context>

<pallas_src>
import math
import functools

import jax
import jax.numpy as jnp
from jax.experimental import pallas as pl
from jax.experimental.pallas import tpu as pltpu

LANE = 128   # lane width: hidden/output dims are zero-padded to this
SUB = 8      # sublane quantum: batch / input-feature dims padded to multiples of this


def _round_up(x, m):
    return ((x + m - 1) // m) * m


# --------------------------------------------------------------------------------------
# Kernel
# --------------------------------------------------------------------------------------
def _mlp_kernel(x_ref, w0_ref, wh_ref, b_ref, o_ref, *, n_rest, dot_dtype):
    # x_ref : (TB, F_pad)              f32   batch tile, only real features (no 128-lane pad)
    # w0_ref: (F_pad, LANE)            bf16  first-layer weight (VMEM-resident)
    # wh_ref: (n_rest, LANE, LANE)     bf16  hidden + output weights (VMEM-resident)
    # b_ref : (n_rest + 1, 1, LANE)    f32   all biases
    # o_ref : (TB, LANE)               f32   lane-dense padded logits
    def sigmoid(h):
        # 1 EUP push (tanh) instead of exp + reciprocal; mul/add go to idle VALU slots.
        return 0.5 * jnp.tanh(0.5 * h) + 0.5

    h = jnp.dot(x_ref[...].astype(dot_dtype), w0_ref[...],
                preferred_element_type=jnp.float32) + b_ref[0]
    h = sigmoid(h)
    for i in range(n_rest):  # statically unrolled -> full LLO scheduler visibility
        h = jnp.dot(h.astype(dot_dtype), wh_ref[i],
                    preferred_element_type=jnp.float32) + b_ref[i + 1]
        if i < n_rest - 1:   # sigmoid on every layer except the final logits layer
            h = sigmoid(h)
    o_ref[...] = h


# --------------------------------------------------------------------------------------
# Parameter packing (done ONCE, outside the jitted forward)
# --------------------------------------------------------------------------------------
def pack_params(params, dot_dtype=jnp.bfloat16):
    """params: list of (W:(in,out), b:(1,out)).  Returns (w0, wh, b_all)."""
    n_lin = len(params)
    assert n_lin >= 2
    f_in, f0_out = params[0][0].shape
    f_pad = max(_round_up(f_in, SUB), SUB)

    w0 = jnp.zeros((f_pad, LANE), jnp.float32).at[:f_in, :f0_out].set(params[0][0])
    wh = jnp.zeros((n_lin - 1, LANE, LANE), jnp.float32)
    b_all = jnp.zeros((n_lin, 1, LANE), jnp.float32)
    b_all = b_all.at[0, :, :f0_out].set(params[0][1].reshape(1, f0_out))
    for i, (w, b) in enumerate(params[1:]):
        fi, fo = w.shape
        assert fi <= LANE and fo <= LANE, "layer wider than LANE not supported"
        wh = wh.at[i, :fi, :fo].set(w)
        b_all = b_all.at[i + 1, :, :fo].set(b.reshape(1, fo))

    return w0.astype(dot_dtype), wh.astype(dot_dtype), b_all


def _default_min_steps():
    # v7x has 2 TensorCores: keep >= 4 grid steps so each TC still pipelines >= 2 steps.
    try:
        kind = jax.devices()[0].device_kind.lower()
    except Exception:
        return 2
    return 4 if "v7" in kind else 2


# --------------------------------------------------------------------------------------
# Forward (jitted end-to-end: pad + pallas_call + slice fuse under one XLA program)
# --------------------------------------------------------------------------------------
@functools.partial(jax.jit, static_argnames=("num_classes", "tb", "min_steps"))
def _mlp_forward_jit(x, w0, wh, b_all, *, num_classes, tb, min_steps):
    B, F = x.shape
    f_pad = w0.shape[0]
    n_rest = wh.shape[0]
    dot_dtype = w0.dtype

    # Batch tiling: big tiles amortize the ~0.35us/step overhead, but keep >= min_steps grid
    # steps (megacore pipelining) and never pad more than ~8 rows per step (no pathological
    # round_up(B, TB) blow-up).
    B8 = _round_up(max(B, 1), SUB)
    n_steps = max(pl.cdiv(B8, tb), min_steps)
    n_steps = min(n_steps, B8 // SUB)           # each tile must have >= 8 rows
    TB = _round_up(pl.cdiv(B8, n_steps), SUB)
    n_steps = pl.cdiv(B8, TB)
    B_pad = n_steps * TB

    # Only pad batch rows (+ feature dim up to the sublane quantum): tiny vs. a 128-lane pad.
    x_in = jnp.pad(x.astype(jnp.float32), ((0, B_pad - B), (0, f_pad - F)))

    out = pl.pallas_call(
        functools.partial(_mlp_kernel, n_rest=n_rest, dot_dtype=dot_dtype),
        out_shape=jax.ShapeDtypeStruct((B_pad, LANE), jnp.float32),
        grid_spec=pltpu.PrefetchScalarGridSpec(
            num_scalar_prefetch=0,
            grid=(n_steps,),
            in_specs=[
                # batch tile marches over the grid; last dim == full array dim (tile-legal)
                pl.BlockSpec((TB, f_pad), lambda i: (i, 0)),
                # weights / biases: constant index_map -> fetched once, VMEM-resident
                pl.BlockSpec((f_pad, LANE), lambda i: (0, 0)),
                pl.BlockSpec((n_rest, LANE, LANE), lambda i: (0, 0, 0)),
                pl.BlockSpec((n_rest + 1, 1, LANE), lambda i: (0, 0, 0)),
            ],
            out_specs=pl.BlockSpec((TB, LANE), lambda i: (i, 0)),
        ),
        compiler_params=pltpu.CompilerParams(
            dimension_semantics=("parallel",),   # shard batch tiles across TCs on v7x
        ),
    )(x_in, w0, wh, b_all)

    # Padded logit lanes are exactly 0 — must be sliced off before any softmax/argmax.
    return out[:B, :num_classes]


def mlp_forward(x, packed, num_classes, *, tb=2048, min_steps=None):
    """x: (B, F) float32. packed = pack_params(params)."""
    if min_steps is None:
        min_steps = _default_min_steps()
    w0, wh, b_all = packed
    return _mlp_forward_jit(x, w0, wh, b_all,
                            num_classes=num_classes, tb=tb, min_steps=min_steps)


# --------------------------------------------------------------------------------------
# Init + reference
# --------------------------------------------------------------------------------------
def init_mlp_params(key, num_features, num_classes, num_layers):
    """Mirrors PyTorch nn.Linear default init: U(-1/sqrt(fan_in), 1/sqrt(fan_in))."""
    num_layers = max(num_layers, 1)
    dims = [num_features, 50] + [50] * num_layers + [num_classes]
    params = []
    for i in range(len(dims) - 1):
        fan_in, fan_out = dims[i], dims[i + 1]
        key, kw, kb = jax.random.split(key, 3)
        bound = 1.0 / math.sqrt(fan_in)
        w = jax.random.uniform(kw, (fan_in, fan_out), jnp.float32, -bound, bound)
        b = jax.random.uniform(kb, (1, fan_out), jnp.float32, -bound, bound)
        params.append((w, b))
    return params


def mlp_reference(x, params):
    h = x
    for i, (w, b) in enumerate(params):
        h = h @ w + b
        if i < len(params) - 1:
            h = jax.nn.sigmoid(h)
    return h


if __name__ == "__main__":
    # Diabetes-style problem: 8 input features, 2 classes, 2 hidden 50-unit layers.
    F, C, L = 8, 2, 2

    key = jax.random.PRNGKey(0)
    key, kx1, kx2 = jax.random.split(key, 3)
    params = init_mlp_params(key, num_features=F, num_classes=C, num_layers=L)

    # Pack (and pad) the weights ONCE; reused across all forward calls.
    packed = pack_params(params, dot_dtype=jnp.bfloat16)

    # Main case: a real batch so the kernel is not purely launch/DMA-latency bound.
    B1 = 1024
    x1 = jax.random.normal(kx1, (B1, F), dtype=jnp.float32)
    logits1 = jax.block_until_ready(mlp_forward(x1, packed, num_classes=C))
    ref1 = mlp_reference(x1, params)
    assert logits1.shape == (B1, C)
    # bf16 MXU operands with f32 accumulation -> relax tolerance vs the f32 reference.
    assert jnp.allclose(logits1, ref1, atol=2e-2, rtol=2e-2), "mismatch vs reference (B=1024)"

    # Tiny / ragged batch sanity check (exercises batch-row padding and TB shrink).
    B2 = 10
    x2 = jax.random.normal(kx2, (B2, F), dtype=jnp.float32)
    logits2 = jax.block_until_ready(mlp_forward(x2, packed, num_classes=C))
    ref2 = mlp_reference(x2, params)
    assert logits2.shape == (B2, C)
    assert jnp.allclose(logits2, ref2, atol=2e-2, rtol=2e-2), "mismatch vs reference (B=10)"

    print("KERNEL_OK")
</pallas_src>

<mosaic_0001>
module attributes {stable_mosaic.version = 11 : i64} {
  func.func @_mlp_kernel(%arg0: i32, %arg1: memref<512x8xf32, #tpu.memory_space<vmem>>, %arg2: memref<8x128xbf16, #tpu.memory_space<vmem>>, %arg3: memref<3x128x128xbf16, #tpu.memory_space<vmem>>, %arg4: memref<4x1x128xf32, #tpu.memory_space<vmem>>, %arg5: memref<512x128xf32, #tpu.memory_space<vmem>>) attributes {dimension_semantics = [#tpu.dimension_semantics<parallel>], iteration_bounds = array<i64: 2>, scalar_prefetch = 0 : i64, scratch_operands = 0 : i64, tpu.core_type = #tpu.core_type<tc>, window_params = [{transform_indices = @transform_0, window_bounds = array<i64: 512, 8>}, {pipeline_mode = #tpu.pipeline_mode<synchronous>, transform_indices = @transform_1, window_bounds = array<i64: 8, 128>}, {pipeline_mode = #tpu.pipeline_mode<synchronous>, transform_indices = @transform_2, window_bounds = array<i64: 3, 128, 128>}, {pipeline_mode = #tpu.pipeline_mode<synchronous>, transform_indices = @transform_3, window_bounds = array<i64: 4, 1, 128>}, {transform_indices = @transform_4, window_bounds = array<i64: 512, 128>}]} {
    %c0 = arith.constant 0 : index
    %c0_0 = arith.constant 0 : index
    %0 = vector.load %arg1[%c0, %c0_0] : memref<512x8xf32, #tpu.memory_space<vmem>>, vector<512x8xf32>
    %1 = arith.truncf %0 : vector<512x8xf32> to vector<512x8xbf16>
    %c0_1 = arith.constant 0 : index
    %c0_2 = arith.constant 0 : index
    %2 = vector.load %arg2[%c0_1, %c0_2] : memref<8x128xbf16, #tpu.memory_space<vmem>>, vector<8x128xbf16>
    %cst = arith.constant dense<0.000000e+00> : vector<512x128xf32>
    %3 = tpu.matmul %1, %2, %cst {dimension_numbers = #tpu.dot_dimension_numbers<[1], [0], [0], [1], [0, 0, 1, 1], [], []>} : vector<512x8xbf16>, vector<8x128xbf16>, vector<512x128xf32> -> vector<512x128xf32>
    %c0_3 = arith.constant 0 : index
    %c0_4 = arith.constant 0 : index
    %c0_5 = arith.constant 0 : index
    %4 = vector.load %arg4[%c0_3, %c0_4, %c0_5] : memref<4x1x128xf32, #tpu.memory_space<vmem>>, vector<1x1x128xf32>
    %5 = vector.shape_cast %4 : vector<1x1x128xf32> to vector<1x128xf32>
    %6 = vector.broadcast %5 : vector<1x128xf32> to vector<512x128xf32>
    %7 = arith.addf %3, %6 : vector<512x128xf32>
    %cst_6 = arith.constant 5.000000e-01 : f32
    %8 = vector.broadcast %cst_6 : f32 to vector<512x128xf32>
    %9 = arith.mulf %8, %7 : vector<512x128xf32>
    %10 = math.tanh %9 : vector<512x128xf32>
    %cst_7 = arith.constant 5.000000e-01 : f32
    %11 = vector.broadcast %cst_7 : f32 to vector<512x128xf32>
    %12 = arith.mulf %11, %10 : vector<512x128xf32>
    %cst_8 = arith.constant 5.000000e-01 : f32
    %13 = vector.broadcast %cst_8 : f32 to vector<512x128xf32>
    %14 = arith.addf %12, %13 : vector<512x128xf32>
    %15 = arith.truncf %14 : vector<512x128xf32> to vector<512x128xbf16>
    %c0_9 = arith.constant 0 : index
    %c0_10 = arith.constant 0 : index
    %c0_11 = arith.constant 0 : index
    %16 = vector.load %arg3[%c0_9, %c0_10, %c0_11] : memref<3x128x128xbf16, #tpu.memory_space<vmem>>, vector<1x128x128xbf16>
    %17 = vector.shape_cast %16 : vector<1x128x128xbf16> to vector<128x128xbf16>
    %cst_12 = arith.constant dense<0.000000e+00> : vector<512x128xf32>
    %18 = tpu.matmul %15, %17, %cst_12 {dimension_numbers = #tpu.dot_dimension_numbers<[1], [0], [0], [1], [0, 0, 1, 1], [], []>} : vector<512x128xbf16>, vector<128x128xbf16>, vector<512x128xf32> -> vector<512x128xf32>
    %c1 = arith.constant 1 : index
    %c0_13 = arith.constant 0 : index
    %c0_14 = arith.constant 0 : index
    %19 = vector.load %arg4[%c1, %c0_13, %c0_14] : memref<4x1x128xf32, #tpu.memory_space<vmem>>, vector<1x1x128xf32>
    %20 = vector.shape_cast %19 : vector<1x1x128xf32> to vector<1x128xf32>
    %21 = vector.broadcast %20 : vector<1x128xf32> to vector<512x128xf32>
    %22 = arith.addf %18, %21 : vector<512x128xf32>
    %cst_15 = arith.constant 5.000000e-01 : f32
    %23 = vector.broadcast %cst_15 : f32 to vector<512x128xf32>
    %24 = arith.mulf %23, %22 : vector<512x128xf32>
    %25 = math.tanh %24 : vector<512x128xf32>
    %cst_16 = arith.constant 5.000000e-01 : f32
    %26 = vector.broadcast %cst_16 : f32 to vector<512x128xf32>
    %27 = arith.mulf %26, %25 : vector<512x128xf32>
    %cst_17 = arith.constant 5.000000e-01 : f32
    %28 = vector.broadcast %cst_17 : f32 to vector<512x128xf32>
    %29 = arith.addf %27, %28 : vector<512x128xf32>
    %30 = arith.truncf %29 : vector<512x128xf32> to vector<512x128xbf16>
    %c1_18 = arith.constant 1 : index
    %c0_19 = arith.constant 0 : index
    %c0_20 = arith.constant 0 : index
    %31 = vector.load %arg3[%c1_18, %c0_19, %c0_20] : memref<3x128x128xbf16, #tpu.memory_space<vmem>>, vector<1x128x128xbf16>
    %32 = vector.shape_cast %31 : vector<1x128x128xbf16> to vector<128x128xbf16>
    %cst_21 = arith.constant dense<0.000000e+00> : vector<512x128xf32>
    %33 = tpu.matmul %30, %32, %cst_21 {dimension_numbers = #tpu.dot_dimension_numbers<[1], [0], [0], [1], [0, 0, 1, 1], [], []>} : vector<512x128xbf16>, vector<128x128xbf16>, vector<512x128xf32> -> vector<512x128xf32>
    %c2 = arith.constant 2 : index
    %c0_22 = arith.constant 0 : index
    %c0_23 = arith.constant 0 : index
    %34 = vector.load %arg4[%c2, %c0_22, %c0_23] : memref<4x1x128xf32, #tpu.memory_space<vmem>>, vector<1x1x128xf32>
    %35 = vector.shape_cast %34 : vector<1x1x128xf32> to vector<1x128xf32>
    %36 = vector.broadcast %35 : vector<1x128xf32> to vector<512x128xf32>
    %37 = arith.addf %33, %36 : vector<512x128xf32>
    %cst_24 = arith.constant 5.000000e-01 : f32
    %38 = vector.broadcast %cst_24 : f32 to vector<512x128xf32>
    %39 = arith.mulf %38, %37 : vector<512x128xf32>
    %40 = math.tanh %39 : vector<512x128xf32>
    %cst_25 = arith.constant 5.000000e-01 : f32
    %41 = vector.broadcast %cst_25 : f32 to vector<512x128xf32>
    %42 = arith.mulf %41, %40 : vector<512x128xf32>
    %cst_26 = arith.constant 5.000000e-01 : f32
    %43 = vector.broadcast %cst_26 : f32 to vector<512x128xf32>
    %44 = arith.addf %42, %43 : vector<512x128xf32>
    %45 = arith.truncf %44 : vector<512x128xf32> to vector<512x128xbf16>
    %c2_27 = arith.constant 2 : index
    %c0_28 = arith.constant 0 : index
    %c0_29 = arith.constant 0 : index
    %46 = vector.load %arg3[%c2_27, %c0_28, %c0_29] : memref<3x128x128xbf16, #tpu.memory_space<vmem>>, vector<1x128x128xbf16>
    %47 = vector.shape_cast %46 : vector<1x128x128xbf16> to vector<128x128xbf16>
    %cst_30 = arith.constant dense<0.000000e+00> : vector<512x128xf32>
    %48 = tpu.matmul %45, %47, %cst_30 {dimension_numbers = #tpu.dot_dimension_numbers<[1], [0], [0], [1], [0, 0, 1, 1], [], []>} : vector<512x128xbf16>, vector<128x128xbf16>, vector<512x128xf32> -> vector<512x128xf32>
    %c3 = arith.constant 3 : index
    %c0_31 = arith.constant 0 : index
    %c0_32 = arith.constant 0 : index
    %49 = vector.load %arg4[%c3, %c0_31, %c0_32] : memref<4x1x128xf32, #tpu.memory_space<vmem>>, vector<1x1x128xf32>
    %50 = vector.shape_cast %49 : vector<1x1x128xf32> to vector<1x128xf32>
    %51 = vector.broadcast %50 : vector<1x128xf32> to vector<512x128xf32>
    %52 = arith.addf %48, %51 : vector<512x128xf32>
    %c0_33 = arith.constant 0 : index
    %c0_34 = arith.constant 0 : index
    %53 = vector.load %arg5[%c0_33, %c0_34] : memref<512x128xf32, #tpu.memory_space<vmem>>, vector<512x128xf32>
    tpu.vector_store %arg5[%c0_33, %c0_34], %52 {strides = array<i32>} : memref<512x128xf32, #tpu.memory_space<vmem>>, vector<512x128xf32>,
    return
  }
  func.func @transform_0(%arg0: i32) -> (i32, i32) {
    %c0_i32 = arith.constant 0 : i32
    %c0_i32_0 = arith.constant 0 : i32
    return %arg0, %c0_i32 : i32, i32
  }
  func.func @transform_1(%arg0: i32) -> (i32, i32) {
    %c0_i32 = arith.constant 0 : i32
    %c0_i32_0 = arith.constant 0 : i32
    %c0_i32_1 = arith.constant 0 : i32
    return %c0_i32, %c0_i32_0 : i32, i32
  }
  func.func @transform_2(%arg0: i32) -> (i32, i32, i32) {
    %c0_i32 = arith.constant 0 : i32
    %c0_i32_0 = arith.constant 0 : i32
    %c0_i32_1 = arith.constant 0 : i32
    %c0_i32_2 = arith.constant 0 : i32
    return %c0_i32, %c0_i32_0, %c0_i32_1 : i32, i32, i32
  }
  func.func @transform_3(%arg0: i32) -> (i32, i32, i32) {
    %c0_i32 = arith.constant 0 : i32
    %c0_i32_0 = arith.constant 0 : i32
    %c0_i32_1 = arith.constant 0 : i32
    %c0_i32_2 = arith.constant 0 : i32
    return %c0_i32, %c0_i32_0, %c0_i32_1 : i32, i32, i32
  }
  func.func @transform_4(%arg0: i32) -> (i32, i32) {
    %c0_i32 = arith.constant 0 : i32
    %c0_i32_0 = arith.constant 0 : i32
    return %arg0, %c0_i32 : i32, i32
  }
}

</mosaic_0001>

<bundles_post_ra>
// kernel: _mlp_forward_jit.1
= control target key start
LH: loop header
LB: loop body
LE: loop exit
PB: predicated region body
PF: predicated region fallthrough
CT: control target
= control target key end

     0   :  { %s2907_s15 = smov 0   ;;  %s3481_s0 = inlined_call_operand.vmem [shape: f32[1024,8], index: 0, kind: input, shape index: {}]   ;;  %s3482_s1 = inlined_call_operand.vmem [shape: bf16[8,128], index: 1, kind: input, shape index: {}]   ;;  %s3483_s2 = inlined_call_operand.vmem [shape: bf16[3,128,128], index: 2, kind: input, shape index: {}]   ;;  %s3484_s3 = inlined_call_operand.vmem [shape: f32[4,1,128], index: 3, kind: input, shape index: {}]   ;;  %s3485_s4 = inlined_call_operand.vmem [shape: f32[1024,128], index: 4, kind: output, shape index: {}]  }
   0x1 LB: > { %s2273_s16 = sadd.s32 4294967295, %s2880_s15   ;;  %p2277_p0 = scmp.ge.s32.totalorder %s2880_s15, 1  ;;  %s2880_s15 = sphi %s2907_s15, %s14_s15  }
   0x2   : > { %p163_p1 = scmp.lt.s32.totalorder %s2880_s15, 3 }
   0x4   : > { %p164_p2 = pnand %p2277_p0, %p163_p1 }
   0x5   : > { %s2278_s19 = sshll.u32 (!%p164_p2), %s2273_s16, 6 }
   0x6   : > { %167 = sbr.rel (%p164_p2) target bundleno = 1115 (0x45b), region = 36  ;;  %p190_p3 = scmp.lt.s32.totalorder (!%p164_p2), %s2278_s19, 127 }
   0xb   : > { %v298_v0 = vld [vmem:[%s3482_s1] sm:$0xf]  ;;  %vm400_vm0 = vcmask 1043456   ;;  %s3487_s19 = smov (!%p190_p3, %s2278_s19), 127  ;;  %vm303_vm1 = vcmask 64512   ;;  %v2454_v20 = vld [vmem:[%s3483_s2 + $0x38] sm:$0xff] }
   0xc   : > { %v402_v1 = vsel %vm400_vm0, %v298_v0, 0  ;;  %s2279_s20 = sshll.u32 %s3487_s19, 3  ;;  %930 = vmatpush.bf16.msra.mxu1 %v2454_v20  ;;  %v2453_v21 = vld [vmem:[%s3483_s2 + $0x30] sm:$0xff]  ;;  %v2452_v25 = vld [vmem:[%s3483_s2 + $0x28] sm:$0xff]  ;;  %v2451_v26 = vld [vmem:[%s3483_s2 + $0x20] sm:$0xff] }
   0xd   : > { %411 = vmatpush.bf16.msra.mxu0 %v402_v1  ;;  %s2926_s23 = scalar_lea.vmem %s3481_s0, %s2279_s20  ;;  %v2450_v27 = vld [vmem:[%s3483_s2 + $0x18] sm:$0xff]  ;;  %v2449_v30 = vld [vmem:[%s3483_s2 + $0x10] sm:$0xff]  ;;  %v2448_v32 = vld [vmem:[%s3483_s2 + $0x8] sm:$0xff]  ;;  %s3255_s18 = scalar_lea.vmem %s3485_s4, %s2279_s20 }
   0xe   : > { %v202_v2 = vld [vmem:[%s2926_s23] sm:$0xff]  ;;  %v203_v3 = vld [vmem:[%s2926_s23 + $0x8] sm:$0xff]  ;;  %v204_v5 = vld [vmem:[%s2926_s23 + $0x10] sm:$0xff] }
   0xf   : > { %v266_v4 = vpack.c.bf16 %v203_v3, %v202_v2  ;;  %v205_v6 = vld [vmem:[%s2926_s23 + $0x18] sm:$0xff]  ;;  %v206_v8 = vld [vmem:[%s2926_s23 + $0x20] sm:$0xff]  ;;  %v207_v9 = vld [vmem:[%s2926_s23 + $0x28] sm:$0xff] }
  0x10   : > { %v267_v7 = vpack.c.bf16 %v205_v6, %v204_v5  ;;  %v268_v10 = vpack.c.bf16 %v207_v9, %v206_v8  ;;  %v208_v11 = vld [vmem:[%s2926_s23 + $0x30] sm:$0xff]  ;;  %v209_v12 = vld [vmem:[%s2926_s23 + $0x38] sm:$0xff]  ;;  %v210_v14 = vld [vmem:[%s2926_s23 + $0x40] sm:$0xff]  ;;  %931 = vmatpush.bf16.msra.mxu1 %v2453_v21 }
  0x11   : > { %2282 = vmatmul.msk.bf16.vlgmr.msra.gmra.mxu0 %vm303_vm1, %v266_v4  ;;  %v269_v13 = vpack.c.bf16 %v209_v12, %v208_v11  ;;  %v211_v15 = vld [vmem:[%s2926_s23 + $0x48] sm:$0xff]  ;;  %v212_v17 = vld [vmem:[%s2926_s23 + $0x50] sm:$0xff]  ;;  %v213_v18 = vld [vmem:[%s2926_s23 + $0x58] sm:$0xff] }
  0x12   : > { %v270_v16 = vpack.c.bf16 %v211_v15, %v210_v14  ;;  %v271_v19 = vpack.c.bf16 %v213_v18, %v212_v17  ;;  %v214_v22 = vld [vmem:[%s2926_s23 + $0x60] sm:$0xff]  ;;  %v215_v23 = vld [vmem:[%s2926_s23 + $0x68] sm:$0xff]  ;;  %v216_v28 = vld [vmem:[%s2926_s23 + $0x70] sm:$0xff] }
  0x13   : > { %v272_v24 = vpack.c.bf16 %v215_v23, %v214_v22  ;;  %v217_v29 = vld [vmem:[%s2926_s23 + $0x78] sm:$0xff]  ;;  %v2447_v33 = vld [vmem:[%s3483_s2] sm:$0xff]  ;;  %v219_v35 = vld [vmem:[%s2926_s23 + $0x88] sm:$0xff] }
  0x14   : > { %932 = vmatpush.bf16.msra.mxu1 %v2452_v25  ;;  %v273_v31 = vpack.c.bf16 %v217_v29, %v216_v28  ;;  %v218_v34 = vld [vmem:[%s2926_s23 + $0x80] sm:$0xff]  ;;  %v220_v44 = vld [vmem:[%s2926_s23 + $0x90] sm:$0xff]  ;;  %v221_v45 = vld [vmem:[%s2926_s23 + $0x98] sm:$0xff] }
  0x15   : > { %v2981_v36 = vld [vmem:[%s3484_s3] ss:$0 sm:$0xff]  ;;  %v274_v37 = vpack.c.bf16 %v219_v35, %v218_v34  ;;  %v275_v47 = vpack.c.bf16 %v221_v45, %v220_v44  ;;  %v223_v61 = vld [vmem:[%s2926_s23 + $0xa8] sm:$0xff]  ;;  %v224_v12 = vld [vmem:[%s2926_s23 + $0xb0] sm:$0xff] }
  0x16   : > { %v222_v60 = vld [vmem:[%s2926_s23 + $0xa0] sm:$0xff]  ;;  %v227_v29 = vld [vmem:[%s2926_s23 + $0xc8] sm:$0xff]  ;;  %v228_v45 = vld [vmem:[%s2926_s23 + $0xd0] sm:$0xff] }
  0x17   : > { %v276_v63 = vpack.c.bf16 %v223_v61, %v222_v60  ;;  %v226_v28 = vld [vmem:[%s2926_s23 + $0xc0] sm:$0xff] }
  0x18   : > { %933 = vmatpush.bf16.msra.mxu1 %v2451_v26  ;;  %v230_v61 = vld [vmem:[%s2926_s23 + $0xe0] sm:$0xff] }
  0x1c   : > { %934 = vmatpush.bf16.msra.mxu1 %v2450_v27 }
  0x20   : > { %935 = vmatpush.bf16.msra.mxu1 %v2449_v30 }
  0x21   : > { %2283 = vmatmul.msk.bf16.gmra.mxu0 %vm303_vm1, %v267_v7 }
  0x24   : > { %936 = vmatpush.bf16.msra.mxu1 %v2448_v32 }
  0x28   : > { %937 = vmatpush.bf16.msra.mxu1 %v2447_v33 }
  0x31   : > { %2284 = vmatmul.msk.bf16.gmra.mxu0 %vm303_vm1, %v268_v10 }
  0x41   : > { %2285 = vmatmul.msk.bf16.gmra.mxu0 %vm303_vm1, %v269_v13  ;;  %v225_v13 = vld [vmem:[%s2926_s23 + $0xb8] sm:$0xff] }
  0x42   : > { %v277_v15 = vpack.c.bf16 %v225_v13, %v224_v12  ;;  %v232_v13 = vld [vmem:[%s2926_s23 + $0xf0] sm:$0xff] }
  0x51   : > { %2286 = vmatmul.msk.bf16.gmra.mxu0 %vm303_vm1, %v270_v16 }
  0x61   : > { %2287 = vmatmul.msk.bf16.gmra.mxu0 %vm303_vm1, %v271_v19 }
  0x71   : > { %2288 = vmatmul.msk.bf16.gmra.mxu0 %vm303_vm1, %v272_v24 }
  0x81   : > { %2289 = vmatmul.msk.bf16.gmra.mxu0 %vm303_vm1, %v273_v31  ;;  %v278_v31 = vpack.c.bf16 %v227_v29, %v226_v28  ;;  %v2460_v29 = vld [vmem:[%s3483_s2 + $0x68] sm:$0xff] }
  0x8e   : > { %v413_v38 = vpop.f32.mrf.mxu0 }
  0x8f   : > { %v414_v39 = vadd.f32 %v2981_v36, %v413_v38 }
  0x91   : > { %2290 = vmatmul.msk.bf16.gmra.mxu0 %vm303_vm1, %v274_v37  ;;  %v573_v40 = vmul.f32 0.5, %v414_v39 }
  0x93   : > { %2483 = vtanh.f32 %v573_v40 }
  0x96   : > { %v415_v41 = vpop.f32.mrf.mxu0 }
  0x97   : > { %v416_v42 = vadd.f32 %v2981_v36, %v415_v41 }
  0x99   : > { %v574_v43 = vmul.f32 0.5, %v416_v42  ;;  %v2484_v46 = vpop.eup %2483 }
  0x9a   : > { %v701_v50 = vmul.f32 0.5, %v2484_v46  ;;  %v229_v46 = vld [vmem:[%s2926_s23 + $0xd8] sm:$0xff] }
  0x9b   : > { %2485 = vtanh.f32 %v574_v43 }
  0x9c   : > { %v765_v54 = vadd.f32 0.5, %v701_v50 }
  0x9e   : > { %v418_v48 = vpop.f32.mrf.mxu0 }
  0x9f   : > { %v419_v49 = vadd.f32 %v2981_v36, %v418_v48  ;;  %v279_v48 = vpack.c.bf16 %v229_v46, %v228_v45 }
  0xa1   : > { %v2486_v51 = vpop.eup %2485  ;;  %2291 = vmatmul.msk.bf16.gmra.mxu0 %vm303_vm1, %v275_v47  ;;  %v575_v53 = vmul.f32 0.5, %v419_v49 }
  0xa2   : > { %v702_v52 = vmul.f32 0.5, %v2486_v51 }
  0xa3   : > { %2487 = vtanh.f32 %v575_v53 }
  0xa4   : > { %v766_v55 = vadd.f32 0.5, %v702_v52 }
  0xa6   : > { %v420_v56 = vpop.f32.mrf.mxu0  ;;  %v829_v57 = vpack.c.bf16 %v766_v55, %v765_v54 }
  0xa7   : > { %v421_v58 = vadd.f32 %v2981_v36, %v420_v56 }
  0xa8   : > { %938 = vmatmul.bf16.vlgmr.msra.gmra.mxu1 %v829_v57 }
  0xa9   : > { %v576_v59 = vmul.f32 0.5, %v421_v58  ;;  %v2488_v62 = vpop.eup %2487 }
  0xaa   : > { %v703_v2 = vmul.f32 0.5, %v2488_v62  ;;  %v231_v62 = vld [vmem:[%s2926_s23 + $0xe8] sm:$0xff] }
  0xab   : > { %2489 = vtanh.f32 %v576_v59 }
  0xac   : > { %v767_v6 = vadd.f32 0.5, %v703_v2 }
  0xae   : > { %v423_v0 = vpop.f32.mrf.mxu0 }
  0xaf   : > { %v424_v1 = vadd.f32 %v2981_v36, %v423_v0  ;;  %v280_v0 = vpack.c.bf16 %v231_v62, %v230_v61  ;;  %v3057_v62 = vld [vmem:[%s3484_s3 + $0x1] ss:$0 sm:$0xff] }
  0xb1   : > { %v2490_v3 = vpop.eup %2489  ;;  %2292 = vmatmul.msk.bf16.gmra.mxu0 %vm303_vm1, %v276_v63  ;;  %v577_v5 = vmul.f32 0.5, %v424_v1 }
  0xb2   : > { %v704_v4 = vmul.f32 0.5, %v2490_v3 }
  0xb3   : > { %2491 = vtanh.f32 %v577_v5 }
  0xb4   : > { %v768_v7 = vadd.f32 0.5, %v704_v4 }
  0xb6   : > { %v425_v8 = vpop.f32.mrf.mxu0  ;;  %v830_v9 = vpack.c.bf16 %v768_v7, %v767_v6 }
  0xb7   : > { %v426_v10 = vadd.f32 %v2981_v36, %v425_v8 }
  0xb8   : > { %943 = vmatmul.bf16.gmra.mxu1 %v830_v9 }
  0xb9   : > { %v578_v11 = vmul.f32 0.5, %v426_v10  ;;  %v2492_v14 = vpop.eup %2491 }
  0xba   : > { %v705_v18 = vmul.f32 0.5, %v2492_v14  ;;  %v233_v14 = vld [vmem:[%s2926_s23 + $0xf8] sm:$0xff] }
  0xbb   : > { %2493 = vtanh.f32 %v578_v11 }
  0xbc   : > { %v769_v22 = vadd.f32 0.5, %v705_v18  ;;  %v2462_v18 = vld [vmem:[%s3483_s2 + $0x78] sm:$0xff] }
  0xbd   : > { %1457 = vmatpush.bf16.msra.mxu2 %v2462_v18 }
  0xbe   : > { %v428_v16 = vpop.f32.mrf.mxu0 }
  0xbf   : > { %v429_v17 = vadd.f32 %v2981_v36, %v428_v16  ;;  %v281_v16 = vpack.c.bf16 %v233_v14, %v232_v13 }
  0xc1   : > { %v2494_v19 = vpop.eup %2493  ;;  %2293 = vmatmul.msk.bf16.gmra.mxu0 %vm303_vm1, %v277_v15  ;;  %v579_v21 = vmul.f32 0.5, %v429_v17 }
  0xc2   : > { %v706_v20 = vmul.f32 0.5, %v2494_v19 }
  0xc3   : > { %2495 = vtanh.f32 %v579_v21 }
  0xc4   : > { %v770_v23 = vadd.f32 0.5, %v706_v20 }
  0xc6   : > { %v430_v24 = vpop.f32.mrf.mxu0  ;;  %v831_v25 = vpack.c.bf16 %v770_v23, %v769_v22  ;;  %v2461_v23 = vld [vmem:[%s3483_s2 + $0x70] sm:$0xff] }
  0xc7   : > { %v431_v26 = vadd.f32 %v2981_v36, %v430_v24  ;;  %1458 = vmatpush.bf16.msra.mxu2 %v2461_v23 }
  0xc8   : > { %948 = vmatmul.bf16.gmra.mxu1 %v831_v25 }
  0xc9   : > { %v580_v27 = vmul.f32 0.5, %v431_v26  ;;  %v2496_v30 = vpop.eup %2495 }
  0xca   : > { %v707_v34 = vmul.f32 0.5, %v2496_v30 }
  0xcb   : > { %2497 = vtanh.f32 %v580_v27  ;;  %1459 = vmatpush.bf16.msra.mxu2 %v2460_v29 }
  0xcc   : > { %v771_v39 = vadd.f32 0.5, %v707_v34  ;;  %v2459_v34 = vld [vmem:[%s3483_s2 + $0x60] sm:$0xff] }
  0xce   : > { %v433_v32 = vpop.f32.mrf.mxu0 }
  0xcf   : > { %v434_v33 = vadd.f32 %v2981_v36, %v433_v32  ;;  %v234_v32 = vld [vmem:[%s2926_s23 + $0x100] sm:$0xff]  ;;  %1460 = vmatpush.bf16.msra.mxu2 %v2459_v34 }
  0xd1   : > { %v2498_v35 = vpop.eup %2497  ;;  %2294 = vmatmul.msk.bf16.gmra.mxu0 %vm303_vm1, %v278_v31  ;;  %v581_v38 = vmul.f32 0.5, %v434_v33  ;;  %v235_v33 = vld [vmem:[%s2926_s23 + $0x108] sm:$0xff] }
  0xd2   : > { %v708_v37 = vmul.f32 0.5, %v2498_v35 }
  0xd3   : > { %2499 = vtanh.f32 %v581_v38 }
  0xd4   : > { %v772_v40 = vadd.f32 0.5, %v708_v37  ;;  %v282_v37 = vpack.c.bf16 %v235_v33, %v234_v32 }
  0xd6   : > { %v435_v41 = vpop.f32.mrf.mxu0  ;;  %v832_v42 = vpack.c.bf16 %v772_v40, %v771_v39  ;;  %v2458_v39 = vld [vmem:[%s3483_s2 + $0x58] sm:$0xff] }
  0xd7   : > { %v436_v43 = vadd.f32 %v2981_v36, %v435_v41  ;;  %1461 = vmatpush.bf16.msra.mxu2 %v2458_v39 }
  0xd8   : > { %953 = vmatmul.bf16.gmra.mxu1 %v832_v42 }
  0xd9   : > { %v582_v44 = vmul.f32 0.5, %v436_v43  ;;  %v2500_v47 = vpop.eup %2499 }
  0xda   : > { %v709_v51 = vmul.f32 0.5, %v2500_v47 }
  0xdb   : > { %2501 = vtanh.f32 %v582_v44  ;;  %v2457_v44 = vld [vmem:[%s3483_s2 + $0x50] sm:$0xff] }
  0xdc   : > { %v773_v55 = vadd.f32 0.5, %v709_v51  ;;  %1462 = vmatpush.bf16.msra.mxu2 %v2457_v44 }
  0xde   : > { %v438_v49 = vpop.f32.mrf.mxu0 }
  0xdf   : > { %v439_v50 = vadd.f32 %v2981_v36, %v438_v49 }
  0xe1   : > { %v2502_v52 = vpop.eup %2501  ;;  %2295 = vmatmul.msk.bf16.gmra.mxu0 %vm303_vm1, %v279_v48  ;;  %v583_v54 = vmul.f32 0.5, %v439_v50  ;;  %v2456_v50 = vld [vmem:[%s3483_s2 + $0x48] sm:$0xff] }
  0xe2   : > { %v710_v53 = vmul.f32 0.5, %v2502_v52  ;;  %1463 = vmatpush.bf16.msra.mxu2 %v2456_v50 }
  0xe3   : > { %2503 = vtanh.f32 %v583_v54  ;;  %v237_v54 = vld [vmem:[%s2926_s23 + $0x118] sm:$0xff] }
  0xe4   : > { %v774_v56 = vadd.f32 0.5, %v710_v53  ;;  %v236_v53 = vld [vmem:[%s2926_s23 + $0x110] sm:$0xff] }
  0xe6   : > { %v440_v57 = vpop.f32.mrf.mxu0  ;;  %v833_v58 = vpack.c.bf16 %v774_v56, %v773_v55  ;;  %v2455_v55 = vld [vmem:[%s3483_s2 + $0x40] sm:$0xff] }
  0xe7   : > { %v441_v59 = vadd.f32 %v2981_v36, %v440_v57  ;;  %1464 = vmatpush.bf16.msra.mxu2 %v2455_v55  ;;  %v283_v57 = vpack.c.bf16 %v237_v54, %v236_v53 }
  0xe8   : > { %958 = vmatmul.bf16.gmra.mxu1 %v833_v58 }
  0xe9   : > { %v584_v60 = vmul.f32 0.5, %v441_v59  ;;  %v2504_v63 = vpop.eup %2503 }
  0xea   : > { %v711_v3 = vmul.f32 0.5, %v2504_v63 }
  0xeb   : > { %2505 = vtanh.f32 %v584_v60 }
  0xec   : > { %v775_v7 = vadd.f32 0.5, %v711_v3 }
  0xee   : > { %v443_v1 = vpop.f32.mrf.mxu0 }
  0xef   : > { %v444_v2 = vadd.f32 %v2981_v36, %v443_v1 }
  0xf1   : > { %v2506_v4 = vpop.eup %2505  ;;  %2296 = vmatmul.msk.bf16.gmra.mxu0 %vm303_vm1, %v280_v0  ;;  %v585_v6 = vmul.f32 0.5, %v444_v2 }
  0xf2   : > { %v712_v5 = vmul.f32 0.5, %v2506_v4 }
  0xf3   : > { %2507 = vtanh.f32 %v585_v6 }
  0xf4   : > { %v776_v8 = vadd.f32 0.5, %v712_v5 }
  0xf6   : > { %v445_v9 = vpop.f32.mrf.mxu0  ;;  %v834_v10 = vpack.c.bf16 %v776_v8, %v775_v7 }
  0xf7   : > { %v446_v11 = vadd.f32 %v2981_v36, %v445_v9 }
  0xf8   : > { %963 = vmatmul.bf16.gmra.mxu1 %v834_v10  ;;  %v238_v10 = vld [vmem:[%s2926_s23 + $0x120] sm:$0xff] }
  0xf9   : > { %v586_v12 = vmul.f32 0.5, %v446_v11  ;;  %v2508_v15 = vpop.eup %2507  ;;  %v239_v11 = vld [vmem:[%s2926_s23 + $0x128] sm:$0xff] }
  0xfa   : > { %v713_v20 = vmul.f32 0.5, %v2508_v15  ;;  %v284_v14 = vpack.c.bf16 %v239_v11, %v238_v10 }
  0xfb   : > { %2509 = vtanh.f32 %v586_v12 }
  0xfc   : > { %v777_v25 = vadd.f32 0.5, %v713_v20 }
  0xfe   : > { %v448_v17 = vpop.f32.mrf.mxu0 }
  0xff   : > { %v449_v19 = vadd.f32 %v2981_v36, %v448_v17 }
 0x101   : > { %v2510_v21 = vpop.eup %2509  ;;  %2297 = vmatmul.msk.bf16.gmra.mxu0 %vm303_vm1, %v281_v16  ;;  %v587_v24 = vmul.f32 0.5, %v449_v19 }
 0x102   : > { %v714_v22 = vmul.f32 0.5, %v2510_v21 }
 0x103   : > { %2511 = vtanh.f32 %v587_v24 }
 0x104   : > { %v778_v26 = vadd.f32 0.5, %v714_v22 }
 0x106   : > { %v450_v27 = vpop.f32.mrf.mxu0  ;;  %v835_v28 = vpack.c.bf16 %v778_v26, %v777_v25 }
 0x107   : > { %v451_v30 = vadd.f32 %v2981_v36, %v450_v27 }
 0x108   : > { %968 = vmatmul.bf16.gmra.mxu1 %v835_v28 }
 0x109   : > { %v588_v31 = vmul.f32 0.5, %v451_v30  ;;  %v2512_v35 = vpop.eup %2511 }
 0x10a   : > { %v715_v41 = vmul.f32 0.5, %v2512_v35 }
 0x10b   : > { %2513 = vtanh.f32 %v588_v31 }
 0x10c   : > { %v779_v46 = vadd.f32 0.5, %v715_v41 }
 0x10e   : > { %v453_v38 = vpop.f32.mrf.mxu0 }
 0x10f   : > { %v454_v40 = vadd.f32 %v2981_v36, %v453_v38  ;;  %v241_v38 = vld [vmem:[%s2926_s23 + $0x138] sm:$0xff] }
 0x111   : > { %v2514_v42 = vpop.eup %2513  ;;  %2298 = vmatmul.msk.bf16.gmra.mxu0 %vm303_vm1, %v282_v37  ;;  %v589_v45 = vmul.f32 0.5, %v454_v40  ;;  %v240_v37 = vld [vmem:[%s2926_s23 + $0x130] sm:$0xff] }
 0x112   : > { %v716_v43 = vmul.f32 0.5, %v2514_v42  ;;  %v285_v44 = vpack.c.bf16 %v241_v38, %v240_v37 }
 0x113   : > { %2515 = vtanh.f32 %v589_v45 }
 0x114   : > { %v780_v47 = vadd.f32 0.5, %v716_v43 }
 0x116   : > { %v455_v48 = vpop.f32.mrf.mxu0  ;;  %v836_v49 = vpack.c.bf16 %v780_v47, %v779_v46 }
 0x117   : > { %v456_v51 = vadd.f32 %v2981_v36, %v455_v48 }
 0x118   : > { %973 = vmatmul.bf16.gmra.mxu1 %v836_v49 }
 0x119   : > { %v590_v52 = vmul.f32 0.5, %v456_v51  ;;  %v2516_v56 = vpop.eup %2515 }
 0x11a   : > { %v717_v60 = vmul.f32 0.5, %v2516_v56 }
 0x11b   : > { %2517 = vtanh.f32 %v590_v52 }
 0x11c   : > { %v781_v1 = vadd.f32 0.5, %v717_v60 }
 0x11e   : > { %v458_v58 = vpop.f32.mrf.mxu0 }
 0x11f   : > { %v459_v59 = vadd.f32 %v2981_v36, %v458_v58 }
 0x121   : > { %v2518_v61 = vpop.eup %2517  ;;  %2299 = vmatmul.msk.bf16.gmra.mxu0 %vm303_vm1, %v283_v57  ;;  %v591_v0 = vmul.f32 0.5, %v459_v59 }
 0x122   : > { %v718_v63 = vmul.f32 0.5, %v2518_v61 }
 0x123   : > { %2519 = vtanh.f32 %v591_v0 }
 0x124   : > { %v782_v2 = vadd.f32 0.5, %v718_v63 }
 0x125   : > { %v939_v3 = vpop.f32.mrf.mxu1 }
 0x126   : > { %v940_v4 = vadd.f32 %v3057_v62, %v939_v3  ;;  %v460_v5 = vpop.f32.mrf.mxu0  ;;  %v837_v6 = vpack.c.bf16 %v782_v2, %v781_v1  ;;  %v242_v3 = vld [vmem:[%s2926_s23 + $0x140] sm:$0xff] }
 0x127   : > { %v461_v7 = vadd.f32 %v2981_v36, %v460_v5 }
 0x128   : > { %978 = vmatmul.bf16.gmra.mxu1 %v837_v6  ;;  %v1099_v9 = vmul.f32 0.5, %v940_v4  ;;  %v243_v4 = vld [vmem:[%s2926_s23 + $0x148] sm:$0xff] }
 0x129   : > { %v592_v8 = vmul.f32 0.5, %v461_v7  ;;  %v2520_v12 = vpop.eup %2519  ;;  %v286_v10 = vpack.c.bf16 %v243_v4, %v242_v3 }
 0x12a   : > { %v719_v18 = vmul.f32 0.5, %v2520_v12 }
 0x12b   : > { %2521 = vtanh.f32 %v592_v8 }
 0x12c   : > { %2523 = vtanh.f32 %v1099_v9  ;;  %v783_v24 = vadd.f32 0.5, %v719_v18 }
 0x12d   : > { %v941_v13 = vpop.f32.mrf.mxu1 }
 0x12e   : > { %v942_v15 = vadd.f32 %v3057_v62, %v941_v13  ;;  %v463_v16 = vpop.f32.mrf.mxu0 }
 0x12f   : > { %v464_v17 = vadd.f32 %v2981_v36, %v463_v16 }
 0x130   : > { %v1100_v19 = vmul.f32 0.5, %v942_v15 }
 0x131   : > { %v2522_v20 = vpop.eup %2521  ;;  %2300 = vmatmul.msk.bf16.gmra.mxu0 %vm303_vm1, %v284_v14  ;;  %v593_v22 = vmul.f32 0.5, %v464_v17 }
 0x132   : > { %2525 = vtanh.f32 %v1100_v19  ;;  %v720_v21 = vmul.f32 0.5, %v2522_v20  ;;  %v2524_v23 = vpop.eup %2523 }
 0x133   : > { %v1227_v30 = vmul.f32 0.5, %v2524_v23  ;;  %2527 = vtanh.f32 %v593_v22 }
 0x134   : > { %v784_v25 = vadd.f32 0.5, %v720_v21 }
 0x135   : > { %v944_v26 = vpop.f32.mrf.mxu1  ;;  %v1291_v39 = vadd.f32 0.5, %v1227_v30 }
 0x136   : > { %v945_v27 = vadd.f32 %v3057_v62, %v944_v26  ;;  %v465_v28 = vpop.f32.mrf.mxu0  ;;  %v838_v29 = vpack.c.bf16 %v784_v25, %v783_v24 }
 0x137   : > { %v466_v31 = vadd.f32 %v2981_v36, %v465_v28 }
 0x138   : > { %v2526_v32 = vpop.eup %2525  ;;  %983 = vmatmul.bf16.gmra.mxu1 %v838_v29  ;;  %v1101_v35 = vmul.f32 0.5, %v945_v27 }
 0x139   : > { %v594_v33 = vmul.f32 0.5, %v466_v31  ;;  %v1228_v34 = vmul.f32 0.5, %v2526_v32  ;;  %v2528_v41 = vpop.eup %2527  ;;  %v244_v32 = vld [vmem:[%s2926_s23 + $0x150] sm:$0xff] }
 0x13a   : > { %v721_v48 = vmul.f32 0.5, %v2528_v41 }
 0x13b   : > { %2529 = vtanh.f32 %v594_v33  ;;  %v1292_v40 = vadd.f32 0.5, %v1228_v34  ;;  %v245_v33 = vld [vmem:[%s2926_s23 + $0x158] sm:$0xff] }
 0x13c   : > { %2531 = vtanh.f32 %v1101_v35  ;;  %v785_v54 = vadd.f32 0.5, %v721_v48 }
 0x13d   : > { %v946_v42 = vpop.f32.mrf.mxu1  ;;  %v1355_v43 = vpack.c.bf16 %v1292_v40, %v1291_v39  ;;  %v287_v40 = vpack.c.bf16 %v245_v33, %v244_v32 }
 0x13e   : > { %v947_v45 = vadd.f32 %v3057_v62, %v946_v42  ;;  %v468_v46 = vpop.f32.mrf.mxu0 }
 0x13f   : > { %v469_v47 = vadd.f32 %v2981_v36, %v468_v46  ;;  %1465 = vmatmul.bf16.vlgmr.msra.gmra.mxu2 %v1355_v43 }
 0x140   : > { %v1102_v49 = vmul.f32 0.5, %v947_v45 }
 0x141   : > { %v2530_v50 = vpop.eup %2529  ;;  %2301 = vmatmul.msk.bf16.gmra.mxu0 %vm303_vm1, %v285_v44  ;;  %v595_v52 = vmul.f32 0.5, %v469_v47 }
 0x142   : > { %2533 = vtanh.f32 %v1102_v49  ;;  %v722_v51 = vmul.f32 0.5, %v2530_v50  ;;  %v2532_v53 = vpop.eup %2531 }
 0x143   : > { %v1229_v60 = vmul.f32 0.5, %v2532_v53  ;;  %2535 = vtanh.f32 %v595_v52 }
 0x144   : > { %v786_v55 = vadd.f32 0.5, %v722_v51 }
 0x145   : > { %v949_v56 = vpop.f32.mrf.mxu1  ;;  %v1293_v5 = vadd.f32 0.5, %v1229_v60 }
 0x146   : > { %v950_v57 = vadd.f32 %v3057_v62, %v949_v56  ;;  %v470_v58 = vpop.f32.mrf.mxu0  ;;  %v839_v59 = vpack.c.bf16 %v786_v55, %v785_v54 }
 0x147   : > { %v471_v61 = vadd.f32 %v2981_v36, %v470_v58 }
 0x148   : > { %v2534_v63 = vpop.eup %2533  ;;  %988 = vmatmul.bf16.gmra.mxu1 %v839_v59  ;;  %v1103_v2 = vmul.f32 0.5, %v950_v57 }
 0x149   : > { %v596_v0 = vmul.f32 0.5, %v471_v61  ;;  %v1230_v1 = vmul.f32 0.5, %v2534_v63  ;;  %v2536_v7 = vpop.eup %2535  ;;  %v246_v63 = vld [vmem:[%s2926_s23 + $0x160] sm:$0xff] }
 0x14a   : > { %v723_v14 = vmul.f32 0.5, %v2536_v7 }
 0x14b   : > { %2537 = vtanh.f32 %v596_v0  ;;  %v1294_v6 = vadd.f32 0.5, %v1230_v1  ;;  %v247_v0 = vld [vmem:[%s2926_s23 + $0x168] sm:$0xff] }
 0x14c   : > { %2539 = vtanh.f32 %v1103_v2  ;;  %v787_v20 = vadd.f32 0.5, %v723_v14 }
 0x14d   : > { %v951_v8 = vpop.f32.mrf.mxu1  ;;  %v1356_v9 = vpack.c.bf16 %v1294_v6, %v1293_v5  ;;  %v288_v6 = vpack.c.bf16 %v247_v0, %v246_v63 }
 0x14e   : > { %v952_v11 = vadd.f32 %v3057_v62, %v951_v8  ;;  %v473_v12 = vpop.f32.mrf.mxu0 }
 0x14f   : > { %v474_v13 = vadd.f32 %v2981_v36, %v473_v12  ;;  %1470 = vmatmul.bf16.gmra.mxu2 %v1356_v9 }
 0x150   : > { %v1104_v15 = vmul.f32 0.5, %v952_v11 }
 0x151   : > { %v2538_v16 = vpop.eup %2537  ;;  %2302 = vmatmul.msk.bf16.gmra.mxu0 %vm303_vm1, %v286_v10  ;;  %v597_v18 = vmul.f32 0.5, %v474_v13 }
 0x152   : > { %2541 = vtanh.f32 %v1104_v15  ;;  %v724_v17 = vmul.f32 0.5, %v2538_v16  ;;  %v2540_v19 = vpop.eup %2539 }
 0x153   : > { %v1231_v26 = vmul.f32 0.5, %v2540_v19  ;;  %2543 = vtanh.f32 %v597_v18 }
 0x154   : > { %v788_v21 = vadd.f32 0.5, %v724_v17 }
 0x155   : > { %v954_v22 = vpop.f32.mrf.mxu1  ;;  %v1295_v34 = vadd.f32 0.5, %v1231_v26 }
 0x156   : > { %v955_v23 = vadd.f32 %v3057_v62, %v954_v22  ;;  %v475_v24 = vpop.f32.mrf.mxu0  ;;  %v840_v25 = vpack.c.bf16 %v788_v21, %v787_v20 }
 0x157   : > { %v476_v27 = vadd.f32 %v2981_v36, %v475_v24 }
 0x158   : > { %v2542_v28 = vpop.eup %2541  ;;  %993 = vmatmul.bf16.gmra.mxu1 %v840_v25  ;;  %v1105_v31 = vmul.f32 0.5, %v955_v23 }
 0x159   : > { %v598_v29 = vmul.f32 0.5, %v476_v27  ;;  %v1232_v30 = vmul.f32 0.5, %v2542_v28  ;;  %v2544_v37 = vpop.eup %2543  ;;  %v248_v28 = vld [vmem:[%s2926_s23 + $0x170] sm:$0xff] }
 0x15a   : > { %v725_v44 = vmul.f32 0.5, %v2544_v37 }
 0x15b   : > { %2545 = vtanh.f32 %v598_v29  ;;  %v1296_v35 = vadd.f32 0.5, %v1232_v30  ;;  %v249_v29 = vld [vmem:[%s2926_s23 + $0x178] sm:$0xff] }
 0x15c   : > { %2547 = vtanh.f32 %v1105_v31  ;;  %v789_v50 = vadd.f32 0.5, %v725_v44 }
 0x15d   : > { %v956_v38 = vpop.f32.mrf.mxu1  ;;  %v1357_v39 = vpack.c.bf16 %v1296_v35, %v1295_v34  ;;  %v289_v35 = vpack.c.bf16 %v249_v29, %v248_v28  ;;  %v2470_v28 = vld [vmem:[%s3483_s2 + $0xb8] sm:$0xff] }
 0x15e   : > { %v957_v41 = vadd.f32 %v3057_v62, %v956_v38  ;;  %v478_v42 = vpop.f32.mrf.mxu0  ;;  %1984 = vmatpush.bf16.msra.mxu3 %v2470_v28  ;;  %v256_v28 = vld [vmem:[%s2926_s23 + $0x1b0] sm:$0xff] }
 0x15f   : > { %v479_v43 = vadd.f32 %v2981_v36, %v478_v42  ;;  %1475 = vmatmul.bf16.gmra.mxu2 %v1357_v39 }
 0x160   : > { %v1106_v45 = vmul.f32 0.5, %v957_v41 }
 0x161   : > { %v2546_v46 = vpop.eup %2545  ;;  %2303 = vmatmul.msk.bf16.gmra.mxu0 %vm303_vm1, %v287_v40  ;;  %v599_v48 = vmul.f32 0.5, %v479_v43 }
 0x162   : > { %v726_v47 = vmul.f32 0.5, %v2546_v46  ;;  %2549 = vtanh.f32 %v1106_v45  ;;  %v2548_v49 = vpop.eup %2547 }
 0x163   : > { %v1233_v56 = vmul.f32 0.5, %v2548_v49  ;;  %2551 = vtanh.f32 %v599_v48 }
 0x164   : > { %v790_v51 = vadd.f32 0.5, %v726_v47 }
 0x165   : > { %v959_v52 = vpop.f32.mrf.mxu1  ;;  %v1297_v1 = vadd.f32 0.5, %v1233_v56 }
 0x166   : > { %v960_v53 = vadd.f32 %v3057_v62, %v959_v52  ;;  %v480_v54 = vpop.f32.mrf.mxu0  ;;  %v841_v55 = vpack.c.bf16 %v790_v51, %v789_v50 }
 0x167   : > { %v481_v57 = vadd.f32 %v2981_v36, %v480_v54 }
 0x168   : > { %v2550_v58 = vpop.eup %2549  ;;  %998 = vmatmul.bf16.gmra.mxu1 %v841_v55  ;;  %v1107_v61 = vmul.f32 0.5, %v960_v53 }
 0x169   : > { %v600_v59 = vmul.f32 0.5, %v481_v57  ;;  %v1234_v60 = vmul.f32 0.5, %v2550_v58  ;;  %v2552_v3 = vpop.eup %2551  ;;  %v250_v58 = vld [vmem:[%s2926_s23 + $0x180] sm:$0xff] }
 0x16a   : > { %v727_v10 = vmul.f32 0.5, %v2552_v3 }
 0x16b   : > { %2553 = vtanh.f32 %v600_v59  ;;  %v1298_v2 = vadd.f32 0.5, %v1234_v60  ;;  %v251_v59 = vld [vmem:[%s2926_s23 + $0x188] sm:$0xff] }
 0x16c   : > { %2555 = vtanh.f32 %v1107_v61  ;;  %v791_v16 = vadd.f32 0.5, %v727_v10 }
 0x16d   : > { %v961_v4 = vpop.f32.mrf.mxu1  ;;  %v1358_v5 = vpack.c.bf16 %v1298_v2, %v1297_v1  ;;  %v290_v2 = vpack.c.bf16 %v251_v59, %v250_v58  ;;  %v254_v58 = vld [vmem:[%s2926_s23 + $0x1a0] sm:$0xff]  ;;  %v255_v59 = vld [vmem:[%s2926_s23 + $0x1a8] sm:$0xff] }
 0x16e   : > { %v962_v7 = vadd.f32 %v3057_v62, %v961_v4  ;;  %v483_v8 = vpop.f32.mrf.mxu0 }
 0x16f   : > { %v484_v9 = vadd.f32 %v2981_v36, %v483_v8  ;;  %1480 = vmatmul.bf16.gmra.mxu2 %v1358_v5 }
 0x170   : > { %v1108_v11 = vmul.f32 0.5, %v962_v7 }
 0x171   : > { %v2554_v12 = vpop.eup %2553  ;;  %2304 = vmatmul.msk.bf16.gmra.mxu0 %vm303_vm1, %v288_v6  ;;  %v601_v14 = vmul.f32 0.5, %v484_v9 }
 0x172   : > { %v728_v13 = vmul.f32 0.5, %v2554_v12  ;;  %2557 = vtanh.f32 %v1108_v11  ;;  %v2556_v15 = vpop.eup %2555 }
 0x173   : > { %v1235_v22 = vmul.f32 0.5, %v2556_v15  ;;  %2559 = vtanh.f32 %v601_v14 }
 0x174   : > { %v792_v17 = vadd.f32 0.5, %v728_v13 }
 0x175   : > { %v964_v18 = vpop.f32.mrf.mxu1  ;;  %v1299_v30 = vadd.f32 0.5, %v1235_v22 }
 0x176   : > { %v965_v19 = vadd.f32 %v3057_v62, %v964_v18  ;;  %v485_v20 = vpop.f32.mrf.mxu0  ;;  %v842_v21 = vpack.c.bf16 %v792_v17, %v791_v16 }
 0x177   : > { %v486_v23 = vadd.f32 %v2981_v36, %v485_v20 }
 0x178   : > { %v2558_v24 = vpop.eup %2557  ;;  %1003 = vmatmul.bf16.gmra.mxu1 %v842_v21  ;;  %v1109_v27 = vmul.f32 0.5, %v965_v19 }
 0x179   : > { %v602_v25 = vmul.f32 0.5, %v486_v23  ;;  %v1236_v26 = vmul.f32 0.5, %v2558_v24  ;;  %v2560_v32 = vpop.eup %2559  ;;  %v252_v24 = vld [vmem:[%s2926_s23 + $0x190] sm:$0xff] }
 0x17a   : > { %v729_v40 = vmul.f32 0.5, %v2560_v32 }
 0x17b   : > { %2561 = vtanh.f32 %v602_v25  ;;  %v1300_v31 = vadd.f32 0.5, %v1236_v26  ;;  %v253_v25 = vld [vmem:[%s2926_s23 + $0x198] sm:$0xff] }
 0x17c   : > { %2563 = vtanh.f32 %v1109_v27  ;;  %v793_v46 = vadd.f32 0.5, %v729_v40  ;;  %v291_v32 = vpack.c.bf16 %v253_v25, %v252_v24 }
 0x17d   : > { %v966_v33 = vpop.f32.mrf.mxu1  ;;  %v1359_v34 = vpack.c.bf16 %v1300_v31, %v1299_v30 }
 0x17e   : > { %v967_v37 = vadd.f32 %v3057_v62, %v966_v33  ;;  %v488_v38 = vpop.f32.mrf.mxu0 }
 0x17f   : > { %v489_v39 = vadd.f32 %v2981_v36, %v488_v38  ;;  %1485 = vmatmul.bf16.gmra.mxu2 %v1359_v34 }
 0x180   : > { %v1110_v41 = vmul.f32 0.5, %v967_v37  ;;  %v2469_v37 = vld [vmem:[%s3483_s2 + $0xb0] sm:$0xff] }
 0x181   : > { %v2562_v42 = vpop.eup %2561  ;;  %2305 = vmatmul.msk.bf16.gmra.mxu0 %vm303_vm1, %v289_v35  ;;  %v603_v44 = vmul.f32 0.5, %v489_v39  ;;  %1985 = vmatpush.bf16.msra.mxu3 %v2469_v37 }
 0x182   : > { %v730_v43 = vmul.f32 0.5, %v2562_v42  ;;  %2565 = vtanh.f32 %v1110_v41  ;;  %v2564_v45 = vpop.eup %2563 }
 0x183   : > { %v1237_v52 = vmul.f32 0.5, %v2564_v45  ;;  %2567 = vtanh.f32 %v603_v44 }
 0x184   : > { %v794_v47 = vadd.f32 0.5, %v730_v43  ;;  %v2468_v43 = vld [vmem:[%s3483_s2 + $0xa8] sm:$0xff] }
 0x185   : > { %v969_v48 = vpop.f32.mrf.mxu1  ;;  %v1301_v60 = vadd.f32 0.5, %v1237_v52  ;;  %1986 = vmatpush.bf16.msra.mxu3 %v2468_v43 }
 0x186   : > { %v970_v49 = vadd.f32 %v3057_v62, %v969_v48  ;;  %v490_v50 = vpop.f32.mrf.mxu0  ;;  %v843_v51 = vpack.c.bf16 %v794_v47, %v793_v46 }
 0x187   : > { %v491_v53 = vadd.f32 %v2981_v36, %v490_v50 }
 0x188   : > { %v2566_v54 = vpop.eup %2565  ;;  %1008 = vmatmul.bf16.gmra.mxu1 %v843_v51  ;;  %v1111_v57 = vmul.f32 0.5, %v970_v49 }
 0x189   : > { %v604_v55 = vmul.f32 0.5, %v491_v53  ;;  %v1238_v56 = vmul.f32 0.5, %v2566_v54  ;;  %v2568_v63 = vpop.eup %2567  ;;  %v2467_v53 = vld [vmem:[%s3483_s2 + $0xa0] sm:$0xff] }
 0x18a   : > { %v731_v6 = vmul.f32 0.5, %v2568_v63  ;;  %1987 = vmatpush.bf16.msra.mxu3 %v2467_v53  ;;  %v2466_v63 = vld [vmem:[%s3483_s2 + $0x98] sm:$0xff] }
 0x18b   : > { %2569 = vtanh.f32 %v604_v55  ;;  %v1302_v61 = vadd.f32 0.5, %v1238_v56 }
 0x18c   : > { %2571 = vtanh.f32 %v1111_v57  ;;  %v795_v12 = vadd.f32 0.5, %v731_v6 }
 0x18d   : > { %v971_v0 = vpop.f32.mrf.mxu1  ;;  %v1360_v1 = vpack.c.bf16 %v1302_v61, %v1301_v60 }
 0x18e   : > { %v972_v3 = vadd.f32 %v3057_v62, %v971_v0  ;;  %v493_v4 = vpop.f32.mrf.mxu0  ;;  %1988 = vmatpush.bf16.msra.mxu3 %v2466_v63 }
 0x18f   : > { %v494_v5 = vadd.f32 %v2981_v36, %v493_v4  ;;  %1490 = vmatmul.bf16.gmra.mxu2 %v1360_v1 }
 0x190   : > { %v1112_v7 = vmul.f32 0.5, %v972_v3 }
 0x191   : > { %v2570_v8 = vpop.eup %2569  ;;  %2306 = vmatmul.msk.bf16.gmra.mxu0 %vm303_vm1, %v290_v2  ;;  %v605_v10 = vmul.f32 0.5, %v494_v5  ;;  %v292_v2 = vpack.c.bf16 %v255_v59, %v254_v58  ;;  %v3138_v5 = vld [vmem:[%s3484_s3] ss:$0 sm:$0xff] }
 0x192   : > { %v732_v9 = vmul.f32 0.5, %v2570_v8  ;;  %2573 = vtanh.f32 %v1112_v7  ;;  %v2572_v11 = vpop.eup %2571  ;;  %v2465_v7 = vld [vmem:[%s3483_s2 + $0x90] sm:$0xff] }
 0x193   : > { %v1239_v18 = vmul.f32 0.5, %v2572_v11  ;;  %2575 = vtanh.f32 %v605_v10  ;;  %1989 = vmatpush.bf16.msra.mxu3 %v2465_v7 }
 0x194   : > { %v796_v13 = vadd.f32 0.5, %v732_v9 }
 0x195   : > { %v974_v14 = vpop.f32.mrf.mxu1  ;;  %v1303_v26 = vadd.f32 0.5, %v1239_v18 }
 0x196   : > { %v975_v15 = vadd.f32 %v3057_v62, %v974_v14  ;;  %v495_v16 = vpop.f32.mrf.mxu0  ;;  %v844_v17 = vpack.c.bf16 %v796_v13, %v795_v12  ;;  %v2464_v13 = vld [vmem:[%s3483_s2 + $0x88] sm:$0xff] }
 0x197   : > { %v496_v19 = vadd.f32 %v2981_v36, %v495_v16  ;;  %1990 = vmatpush.bf16.msra.mxu3 %v2464_v13 }
 0x198   : > { %v2574_v20 = vpop.eup %2573  ;;  %1013 = vmatmul.bf16.gmra.mxu1 %v844_v17  ;;  %v1113_v23 = vmul.f32 0.5, %v975_v15 }
 0x199   : > { %v606_v21 = vmul.f32 0.5, %v496_v19  ;;  %v1240_v22 = vmul.f32 0.5, %v2574_v20  ;;  %v2576_v29 = vpop.eup %2575 }
 0x19a   : > { %v733_v38 = vmul.f32 0.5, %v2576_v29  ;;  %v257_v29 = vld [vmem:[%s2926_s23 + $0x1b8] sm:$0xff] }
 0x19b   : > { %2577 = vtanh.f32 %v606_v21  ;;  %v1304_v27 = vadd.f32 0.5, %v1240_v22 }
 0x19c   : > { %2579 = vtanh.f32 %v1113_v23  ;;  %v797_v45 = vadd.f32 0.5, %v733_v38  ;;  %v2463_v23 = vld [vmem:[%s3483_s2 + $0x80] sm:$0xff] }
 0x19d   : > { %v976_v30 = vpop.f32.mrf.mxu1  ;;  %v1361_v31 = vpack.c.bf16 %v1304_v27, %v1303_v26  ;;  %1991 = vmatpush.bf16.msra.mxu3 %v2463_v23 }
 0x19e   : > { %v977_v33 = vadd.f32 %v3057_v62, %v976_v30  ;;  %v498_v34 = vpop.f32.mrf.mxu0 }
 0x19f   : > { %v499_v35 = vadd.f32 %v2981_v36, %v498_v34  ;;  %1495 = vmatmul.bf16.gmra.mxu2 %v1361_v31 }
 0x1a0   : > { %v1114_v39 = vmul.f32 0.5, %v977_v33 }
 0x1a1   : > { %v2578_v40 = vpop.eup %2577  ;;  %2307 = vmatmul.msk.bf16.gmra.mxu0 %vm303_vm1, %v291_v32  ;;  %v607_v42 = vmul.f32 0.5, %v499_v35  ;;  %v293_v35 = vpack.c.bf16 %v257_v29, %v256_v28 }
 0x1a2   : > { %v734_v41 = vmul.f32 0.5, %v2578_v40  ;;  %2581 = vtanh.f32 %v1114_v39  ;;  %v2580_v44 = vpop.eup %2579  ;;  %v3160_v40 = vld [vmem:[%s3484_s3 + $0x2] ss:$0 sm:$0xff] }
 0x1a3   : > { %v1241_v51 = vmul.f32 0.5, %v2580_v44  ;;  %2583 = vtanh.f32 %v607_v42 }
 0x1a4   : > { %v798_v46 = vadd.f32 0.5, %v734_v41 }
 0x1a5   : > { %v979_v47 = vpop.f32.mrf.mxu1  ;;  %v1305_v60 = vadd.f32 0.5, %v1241_v51 }
 0x1a6   : > { %v980_v48 = vadd.f32 %v3057_v62, %v979_v47  ;;  %v500_v49 = vpop.f32.mrf.mxu0  ;;  %v845_v50 = vpack.c.bf16 %v798_v46, %v797_v45 }
 0x1a7   : > { %v501_v52 = vadd.f32 %v2981_v36, %v500_v49 }
 0x1a8   : > { %v2582_v54 = vpop.eup %2581  ;;  %1018 = vmatmul.bf16.gmra.mxu1 %v845_v50  ;;  %v1115_v57 = vmul.f32 0.5, %v980_v48 }
 0x1a9   : > { %v608_v55 = vmul.f32 0.5, %v501_v52  ;;  %v1242_v56 = vmul.f32 0.5, %v2582_v54  ;;  %v2584_v36 = vpop.eup %2583 }
 0x1aa   : > { %v735_v8 = vmul.f32 0.5, %v2584_v36  ;;  %v258_v36 = vld [vmem:[%s2926_s23 + $0x1c0] sm:$0xff] }
 0x1ab   : > { %2585 = vtanh.f32 %v608_v55  ;;  %v1306_v61 = vadd.f32 0.5, %v1242_v56 }
 0x1ac   : > { %2587 = vtanh.f32 %v1115_v57  ;;  %v799_v15 = vadd.f32 0.5, %v735_v8 }
 0x1ad   : > { %v981_v0 = vpop.f32.mrf.mxu1  ;;  %v1362_v1 = vpack.c.bf16 %v1306_v61, %v1305_v60 }
 0x1ae   : > { %v982_v3 = vadd.f32 %v3057_v62, %v981_v0  ;;  %v503_v4 = vpop.f32.mrf.mxu0  ;;  %v259_v0 = vld [vmem:[%s2926_s23 + $0x1c8] sm:$0xff] }
 0x1af   : > { %v504_v6 = vadd.f32 %v3138_v5, %v503_v4  ;;  %1500 = vmatmul.bf16.gmra.mxu2 %v1362_v1 }
 0x1b0   : > { %v1116_v9 = vmul.f32 0.5, %v982_v3 }
 0x1b1   : > { %v2586_v10 = vpop.eup %2585  ;;  %2308 = vmatmul.msk.bf16.gmra.mxu0 %vm303_vm1, %v292_v2  ;;  %v609_v12 = vmul.f32 0.5, %v504_v6 }
 0x1b2   : > { %v736_v11 = vmul.f32 0.5, %v2586_v10  ;;  %2589 = vtanh.f32 %v1116_v9  ;;  %v2588_v14 = vpop.eup %2587  ;;  %v294_v9 = vpack.c.bf16 %v259_v0, %v258_v36 }
 0x1b3   : > { %v1243_v21 = vmul.f32 0.5, %v2588_v14  ;;  %2591 = vtanh.f32 %v609_v12 }
 0x1b4   : > { %v800_v16 = vadd.f32 0.5, %v736_v11 }
 0x1b5   : > { %v984_v17 = vpop.f32.mrf.mxu1  ;;  %v1307_v30 = vadd.f32 0.5, %v1243_v21 }
 0x1b6   : > { %v985_v18 = vadd.f32 %v3057_v62, %v984_v17  ;;  %v505_v19 = vpop.f32.mrf.mxu0  ;;  %v846_v20 = vpack.c.bf16 %v800_v16, %v799_v15 }
 0x1b7   : > { %v506_v22 = vadd.f32 %v3138_v5, %v505_v19 }
 0x1b8   : > { %v2590_v24 = vpop.eup %2589  ;;  %1023 = vmatmul.bf16.gmra.mxu1 %v846_v20  ;;  %v1117_v27 = vmul.f32 0.5, %v985_v18 }
 0x1b9   : > { %v610_v25 = vmul.f32 0.5, %v506_v22  ;;  %v1244_v26 = vmul.f32 0.5, %v2590_v24  ;;  %v2592_v32 = vpop.eup %2591 }
 0x1ba   : > { %v737_v41 = vmul.f32 0.5, %v2592_v32 }
 0x1bb   : > { %2593 = vtanh.f32 %v610_v25  ;;  %v1308_v31 = vadd.f32 0.5, %v1244_v26 }
 0x1bc   : > { %2595 = vtanh.f32 %v1117_v27  ;;  %v801_v49 = vadd.f32 0.5, %v737_v41 }
 0x1bd   : > { %v986_v33 = vpop.f32.mrf.mxu1  ;;  %v1363_v34 = vpack.c.bf16 %v1308_v31, %v1307_v30 }
 0x1be   : > { %v987_v37 = vadd.f32 %v3057_v62, %v986_v33  ;;  %v508_v38 = vpop.f32.mrf.mxu0 }
 0x1bf   : > { %v509_v39 = vadd.f32 %v3138_v5, %v508_v38  ;;  %1505 = vmatmul.bf16.gmra.mxu2 %v1363_v34 }
 0x1c0   : > { %v1118_v42 = vmul.f32 0.5, %v987_v37 }
 0x1c1   : > { %v2594_v43 = vpop.eup %2593  ;;  %2309 = vmatmul.msk.bf16.gmra.mxu0 %vm303_vm1, %v293_v35  ;;  %v611_v46 = vmul.f32 0.5, %v509_v39 }
 0x1c2   : > { %v738_v44 = vmul.f32 0.5, %v2594_v43  ;;  %2597 = vtanh.f32 %v1118_v42  ;;  %v1466_v45 = vpop.f32.mrf.mxu2  ;;  %v2596_v48 = vpop.eup %2595 }
 0x1c3   : > { %v1467_v47 = vadd.f32 %v3160_v40, %v1466_v45  ;;  %v1245_v56 = vmul.f32 0.5, %v2596_v48  ;;  %2599 = vtanh.f32 %v611_v46  ;;  %v261_v45 = vld [vmem:[%s2926_s23 + $0x1d8] sm:$0xff] }
 0x1c4   : > { %v802_v50 = vadd.f32 0.5, %v738_v44  ;;  %v260_v44 = vld [vmem:[%s2926_s23 + $0x1d0] sm:$0xff] }
 0x1c5   : > { %v989_v51 = vpop.f32.mrf.mxu1  ;;  %v1626_v52 = vmul.f32 0.5, %v1467_v47  ;;  %v1309_v2 = vadd.f32 0.5, %v1245_v56 }
 0x1c6   : > { %v990_v53 = vadd.f32 %v3057_v62, %v989_v51  ;;  %v510_v54 = vpop.f32.mrf.mxu0  ;;  %v847_v55 = vpack.c.bf16 %v802_v50, %v801_v49 }
 0x1c7   : > { %v511_v57 = vadd.f32 %v3138_v5, %v510_v54  ;;  %2601 = vtanh.f32 %v1626_v52 }
 0x1c8   : > { %v2598_v58 = vpop.eup %2597  ;;  %1028 = vmatmul.bf16.gmra.mxu1 %v847_v55  ;;  %v1119_v61 = vmul.f32 0.5, %v990_v53  ;;  %v295_v53 = vpack.c.bf16 %v261_v45, %v260_v44 }
 0x1c9   : > { %v612_v59 = vmul.f32 0.5, %v511_v57  ;;  %v1246_v60 = vmul.f32 0.5, %v2598_v58  ;;  %v2600_v4 = vpop.eup %2599 }
 0x1ca   : > { %v1468_v63 = vpop.f32.mrf.mxu2  ;;  %v739_v14 = vmul.f32 0.5, %v2600_v4 }
 0x1cb   : > { %2603 = vtanh.f32 %v612_v59  ;;  %v1469_v1 = vadd.f32 %v3160_v40, %v1468_v63  ;;  %v1310_v3 = vadd.f32 0.5, %v1246_v60 }
 0x1cc   : > { %2605 = vtanh.f32 %v1119_v61  ;;  %v803_v22 = vadd.f32 0.5, %v739_v14 }
 0x1cd   : > { %v1627_v6 = vmul.f32 0.5, %v1469_v1  ;;  %v991_v7 = vpop.f32.mrf.mxu1  ;;  %v1364_v8 = vpack.c.bf16 %v1310_v3, %v1309_v2  ;;  %v2602_v13 = vpop.eup %2601 }
 0x1ce   : > { %v992_v10 = vadd.f32 %v3057_v62, %v991_v7  ;;  %v513_v11 = vpop.f32.mrf.mxu0  ;;  %v1754_v23 = vmul.f32 0.5, %v2602_v13 }
 0x1cf   : > { %2607 = vtanh.f32 %v1627_v6  ;;  %v514_v12 = vadd.f32 %v3138_v5, %v513_v11  ;;  %1510 = vmatmul.bf16.gmra.mxu2 %v1364_v8 }
 0x1d0   : > { %v1120_v15 = vmul.f32 0.5, %v992_v10  ;;  %v1818_v35 = vadd.f32 0.5, %v1754_v23  ;;  %v262_v23 = vld [vmem:[%s2926_s23 + $0x1e0] sm:$0xff] }
 0x1d1   : > { %v2604_v16 = vpop.eup %2603  ;;  %2310 = vmatmul.msk.bf16.gmra.mxu0 %vm303_vm1, %v294_v9  ;;  %v613_v19 = vmul.f32 0.5, %v514_v12 }
 0x1d2   : > { %v740_v17 = vmul.f32 0.5, %v2604_v16  ;;  %2609 = vtanh.f32 %v1120_v15  ;;  %v1471_v18 = vpop.f32.mrf.mxu2  ;;  %v2606_v21 = vpop.eup %2605 }
 0x1d3   : > { %v1472_v20 = vadd.f32 %v3160_v40, %v1471_v18  ;;  %v1247_v32 = vmul.f32 0.5, %v2606_v21  ;;  %2611 = vtanh.f32 %v613_v19 }
 0x1d4   : > { %v804_v24 = vadd.f32 0.5, %v740_v17 }
 0x1d5   : > { %v2608_v25 = vpop.eup %2607  ;;  %v994_v26 = vpop.f32.mrf.mxu1  ;;  %v1628_v27 = vmul.f32 0.5, %v1472_v20  ;;  %v1311_v47 = vadd.f32 0.5, %v1247_v32 }
 0x1d6   : > { %v995_v28 = vadd.f32 %v3057_v62, %v994_v26  ;;  %v515_v29 = vpop.f32.mrf.mxu0  ;;  %v848_v30 = vpack.c.bf16 %v804_v24, %v803_v22  ;;  %v1755_v31 = vmul.f32 0.5, %v2608_v25  ;;  %v263_v24 = vld [vmem:[%s2926_s23 + $0x1e8] sm:$0xff] }
 0x1d7   : > { %v516_v33 = vadd.f32 %v3138_v5, %v515_v29  ;;  %2613 = vtanh.f32 %v1628_v27  ;;  %v296_v32 = vpack.c.bf16 %v263_v24, %v262_v23 }
 0x1d8   : > { %v2610_v34 = vpop.eup %2609  ;;  %1033 = vmatmul.bf16.gmra.mxu1 %v848_v30  ;;  %v1819_v37 = vadd.f32 0.5, %v1755_v31  ;;  %v1121_v41 = vmul.f32 0.5, %v995_v28 }
 0x1d9   : > { %v614_v38 = vmul.f32 0.5, %v516_v33  ;;  %v1248_v39 = vmul.f32 0.5, %v2610_v34  ;;  %v2612_v49 = vpop.eup %2611 }
 0x1da   : > { %v1473_v42 = vpop.f32.mrf.mxu2  ;;  %v1882_v43 = vpack.c.bf16 %v1819_v37, %v1818_v35  ;;  %v741_v58 = vmul.f32 0.5, %v2612_v49 }
 0x1db   : > { %2615 = vtanh.f32 %v614_v38  ;;  %v1474_v46 = vadd.f32 %v3160_v40, %v1473_v42  ;;  %v1312_v48 = vadd.f32 0.5, %v1248_v39 }
 0x1dc   : > { %1992 = vmatmul.bf16.vlgmr.msra.gmra.mxu3 %v1882_v43  ;;  %2617 = vtanh.f32 %v1121_v41  ;;  %v805_v2 = vadd.f32 0.5, %v741_v58 }
 0x1dd   : > { %v1629_v50 = vmul.f32 0.5, %v1474_v46  ;;  %v996_v51 = vpop.f32.mrf.mxu1  ;;  %v1365_v52 = vpack.c.bf16 %v1312_v48, %v1311_v47  ;;  %v2614_v57 = vpop.eup %2613 }
 0x1de   : > { %v997_v54 = vadd.f32 %v3057_v62, %v996_v51  ;;  %v518_v55 = vpop.f32.mrf.mxu0  ;;  %v1756_v3 = vmul.f32 0.5, %v2614_v57 }
 0x1df   : > { %2619 = vtanh.f32 %v1629_v50  ;;  %v519_v56 = vadd.f32 %v3138_v5, %v518_v55  ;;  %1515 = vmatmul.bf16.gmra.mxu2 %v1365_v52  ;;  %v3194_v52 = vld [vmem:[%s3484_s3 + $0x1] ss:$0 sm:$0xff] }
 0x1e0   : > { %v1122_v59 = vmul.f32 0.5, %v997_v54  ;;  %v1820_v16 = vadd.f32 0.5, %v1756_v3  ;;  %v264_v3 = vld [vmem:[%s2926_s23 + $0x1f0] sm:$0xff] }
 0x1e1   : > { %v2616_v60 = vpop.eup %2615  ;;  %2311 = vmatmul.msk.bf16.gmra.mxu0 %vm303_vm1, %v295_v53  ;;  %v615_v36 = vmul.f32 0.5, %v519_v56 }
 0x1e2   : > { %v742_v61 = vmul.f32 0.5, %v2616_v60  ;;  %2621 = vtanh.f32 %v1122_v59  ;;  %v1476_v63 = vpop.f32.mrf.mxu2  ;;  %v2618_v1 = vpop.eup %2617 }
 0x1e3   : > { %v1477_v0 = vadd.f32 %v3160_v40, %v1476_v63  ;;  %v1249_v13 = vmul.f32 0.5, %v2618_v1  ;;  %2623 = vtanh.f32 %v615_v36 }
 0x1e4   : > { %v806_v4 = vadd.f32 0.5, %v742_v61 }
 0x1e5   : > { %v2620_v6 = vpop.eup %2619  ;;  %v999_v7 = vpop.f32.mrf.mxu1  ;;  %v1630_v8 = vmul.f32 0.5, %v1477_v0  ;;  %v1313_v26 = vadd.f32 0.5, %v1249_v13 }
 0x1e6   : > { %v1000_v9 = vadd.f32 %v3057_v62, %v999_v7  ;;  %v520_v10 = vpop.f32.mrf.mxu0  ;;  %v849_v11 = vpack.c.bf16 %v806_v4, %v805_v2  ;;  %v1757_v12 = vmul.f32 0.5, %v2620_v6  ;;  %v265_v4 = vld [vmem:[%s2926_s23 + $0x1f8] sm:$0xff] }
 0x1e7   : > { %v521_v14 = vadd.f32 %v3138_v5, %v520_v10  ;;  %2625 = vtanh.f32 %v1630_v8  ;;  %v297_v13 = vpack.c.bf16 %v265_v4, %v264_v3 }
 0x1e8   : > { %v2622_v15 = vpop.eup %2621  ;;  %1038 = vmatmul.bf16.gmra.mxu1 %v849_v11  ;;  %v1821_v17 = vadd.f32 0.5, %v1757_v12  ;;  %v1123_v20 = vmul.f32 0.5, %v1000_v9 }
 0x1e9   : > { %v616_v18 = vmul.f32 0.5, %v521_v14  ;;  %v1250_v19 = vmul.f32 0.5, %v2622_v15  ;;  %v2624_v28 = vpop.eup %2623 }
 0x1ea   : > { %v1478_v21 = vpop.f32.mrf.mxu2  ;;  %v1883_v22 = vpack.c.bf16 %v1821_v17, %v1820_v16  ;;  %v743_v38 = vmul.f32 0.5, %v2624_v28 }
 0x1eb   : > { %2627 = vtanh.f32 %v616_v18  ;;  %v1479_v25 = vadd.f32 %v3160_v40, %v1478_v21  ;;  %v1314_v27 = vadd.f32 0.5, %v1250_v19 }
 0x1ec   : > { %1997 = vmatmul.bf16.gmra.mxu3 %v1883_v22  ;;  %2629 = vtanh.f32 %v1123_v20  ;;  %v807_v47 = vadd.f32 0.5, %v743_v38 }
 0x1ed   : > { %v1631_v29 = vmul.f32 0.5, %v1479_v25  ;;  %v1001_v30 = vpop.f32.mrf.mxu1  ;;  %v1366_v31 = vpack.c.bf16 %v1314_v27, %v1313_v26  ;;  %v2626_v37 = vpop.eup %2625 }
 0x1ee   : > { %v1002_v33 = vadd.f32 %v3057_v62, %v1001_v30  ;;  %v523_v34 = vpop.f32.mrf.mxu0  ;;  %v1758_v62 = vmul.f32 0.5, %v2626_v37 }
 0x1ef   : > { %2631 = vtanh.f32 %v1631_v29  ;;  %v524_v35 = vadd.f32 %v3138_v5, %v523_v34  ;;  %1520 = vmatmul.bf16.gmra.mxu2 %v1366_v31 }
 0x1f0   : > { %v1124_v39 = vmul.f32 0.5, %v1002_v33  ;;  %v1822_v60 = vadd.f32 0.5, %v1758_v62 }
 0x1f1   : > { %v2628_v41 = vpop.eup %2627  ;;  %2312 = vmatmul.msk.bf16.gmra.mxu0 %vm303_vm1, %v296_v32  ;;  %v617_v44 = vmul.f32 0.5, %v524_v35 }
 0x1f2   : > { %v744_v42 = vmul.f32 0.5, %v2628_v41  ;;  %2633 = vtanh.f32 %v1124_v39  ;;  %v1481_v43 = vpop.f32.mrf.mxu2  ;;  %v2630_v46 = vpop.eup %2629 }
 0x1f3   : > { %v1482_v45 = vadd.f32 %v3160_v40, %v1481_v43  ;;  %v1251_v57 = vmul.f32 0.5, %v2630_v46  ;;  %2635 = vtanh.f32 %v617_v44 }
 0x1f4   : > { %v808_v48 = vadd.f32 0.5, %v744_v42 }
 0x1f5   : > { %v2632_v49 = vpop.eup %2631  ;;  %v1004_v50 = vpop.f32.mrf.mxu1  ;;  %v1632_v51 = vmul.f32 0.5, %v1482_v45  ;;  %v1315_v6 = vadd.f32 0.5, %v1251_v57 }
 0x1f6   : > { %v1005_v53 = vadd.f32 %v3194_v52, %v1004_v50  ;;  %v525_v54 = vpop.f32.mrf.mxu0  ;;  %v850_v55 = vpack.c.bf16 %v808_v48, %v807_v47  ;;  %v1759_v56 = vmul.f32 0.5, %v2632_v49 }
 0x1f7   : > { %v526_v58 = vadd.f32 %v3138_v5, %v525_v54  ;;  %2637 = vtanh.f32 %v1632_v51 }
 0x1f8   : > { %v2634_v59 = vpop.eup %2633  ;;  %1043 = vmatmul.bf16.gmra.mxu1 %v850_v55  ;;  %v1823_v61 = vadd.f32 0.5, %v1759_v56  ;;  %v1125_v0 = vmul.f32 0.5, %v1005_v53 }
 0x1f9   : > { %v1252_v63 = vmul.f32 0.5, %v2634_v59  ;;  %v618_v36 = vmul.f32 0.5, %v526_v58  ;;  %v2636_v9 = vpop.eup %2635 }
 0x1fa   : > { %v1483_v1 = vpop.f32.mrf.mxu2  ;;  %v1884_v2 = vpack.c.bf16 %v1823_v61, %v1822_v60  ;;  %v745_v18 = vmul.f32 0.5, %v2636_v9 }
 0x1fb   : > { %v1316_v7 = vadd.f32 0.5, %v1252_v63  ;;  %2639 = vtanh.f32 %v618_v36  ;;  %v1484_v8 = vadd.f32 %v3160_v40, %v1483_v1 }
 0x1fc   : > { %2002 = vmatmul.bf16.gmra.mxu3 %v1884_v2  ;;  %2641 = vtanh.f32 %v1125_v0  ;;  %v809_v26 = vadd.f32 0.5, %v745_v18 }
 0x1fd   : > { %v1633_v10 = vmul.f32 0.5, %v1484_v8  ;;  %v1006_v11 = vpop.f32.mrf.mxu1  ;;  %v1367_v12 = vpack.c.bf16 %v1316_v7, %v1315_v6  ;;  %v2638_v17 = vpop.eup %2637 }
 0x1fe   : > { %v1007_v14 = vadd.f32 %v3194_v52, %v1006_v11  ;;  %v528_v15 = vpop.f32.mrf.mxu0  ;;  %v1760_v27 = vmul.f32 0.5, %v2638_v17 }
 0x1ff   : > { %2643 = vtanh.f32 %v1633_v10  ;;  %v529_v16 = vadd.f32 %v3138_v5, %v528_v15  ;;  %1525 = vmatmul.bf16.gmra.mxu2 %v1367_v12 }
 0x200   : > { %v1126_v19 = vmul.f32 0.5, %v1007_v14  ;;  %v1824_v41 = vadd.f32 0.5, %v1760_v27 }
 0x201   : > { %v2640_v20 = vpop.eup %2639  ;;  %2313 = vmatmul.msk.bf16.gmra.mxu0 %vm303_vm1, %v297_v13  ;;  %v619_v23 = vmul.f32 0.5, %v529_v16 }
 0x202   : > { %v746_v21 = vmul.f32 0.5, %v2640_v20  ;;  %2645 = vtanh.f32 %v1126_v19  ;;  %v1486_v22 = vpop.f32.mrf.mxu2  ;;  %v2642_v25 = vpop.eup %2641 }
 0x203   : > { %v1487_v24 = vadd.f32 %v3160_v40, %v1486_v22  ;;  %v1253_v37 = vmul.f32 0.5, %v2642_v25  ;;  %2647 = vtanh.f32 %v619_v23 }
 0x204   : > { %v810_v28 = vadd.f32 0.5, %v746_v21 }
 0x205   : > { %v2644_v29 = vpop.eup %2643  ;;  %v1009_v30 = vpop.f32.mrf.mxu1  ;;  %v1634_v31 = vmul.f32 0.5, %v1487_v24  ;;  %v1317_v62 = vadd.f32 0.5, %v1253_v37 }
 0x206   : > { %v1010_v32 = vadd.f32 %v3194_v52, %v1009_v30  ;;  %v530_v33 = vpop.f32.mrf.mxu0  ;;  %v851_v34 = vpack.c.bf16 %v810_v28, %v809_v26  ;;  %v1761_v35 = vmul.f32 0.5, %v2644_v29 }
 0x207   : > { %v531_v38 = vadd.f32 %v3138_v5, %v530_v33  ;;  %2649 = vtanh.f32 %v1634_v31 }
 0x208   : > { %v2646_v39 = vpop.eup %2645  ;;  %1048 = vmatmul.bf16.gmra.mxu1 %v851_v34  ;;  %v1825_v42 = vadd.f32 0.5, %v1761_v35  ;;  %v1127_v45 = vmul.f32 0.5, %v1010_v32 }
 0x209   : > { %v1254_v43 = vmul.f32 0.5, %v2646_v39  ;;  %v620_v44 = vmul.f32 0.5, %v531_v38  ;;  %v2648_v50 = vpop.eup %2647 }
 0x20a   : > { %v1488_v46 = vpop.f32.mrf.mxu2  ;;  %v1885_v47 = vpack.c.bf16 %v1825_v42, %v1824_v41  ;;  %v747_v59 = vmul.f32 0.5, %v2648_v50 }
 0x20b   : > { %v1318_v48 = vadd.f32 0.5, %v1254_v43  ;;  %2651 = vtanh.f32 %v620_v44  ;;  %v1489_v49 = vadd.f32 %v3160_v40, %v1488_v46 }
 0x20c   : > { %2007 = vmatmul.bf16.gmra.mxu3 %v1885_v47  ;;  %2653 = vtanh.f32 %v1127_v45  ;;  %v811_v3 = vadd.f32 0.5, %v747_v59 }
 0x20d   : > { %v1635_v51 = vmul.f32 0.5, %v1489_v49  ;;  %v1011_v53 = vpop.f32.mrf.mxu1  ;;  %v1368_v54 = vpack.c.bf16 %v1318_v48, %v1317_v62  ;;  %v2650_v58 = vpop.eup %2649 }
 0x20e   : > { %v1012_v55 = vadd.f32 %v3194_v52, %v1011_v53  ;;  %v533_v56 = vpop.f32.mrf.mxu0  ;;  %v1762_v4 = vmul.f32 0.5, %v2650_v58 }
 0x20f   : > { %2655 = vtanh.f32 %v1635_v51  ;;  %v534_v57 = vadd.f32 %v3138_v5, %v533_v56  ;;  %1530 = vmatmul.bf16.gmra.mxu2 %v1368_v54 }
 0x210   : > { %v1128_v60 = vmul.f32 0.5, %v1012_v55  ;;  %v1826_v17 = vadd.f32 0.5, %v1762_v4 }
 0x211   : > { %v2652_v61 = vpop.eup %2651  ;;  %v621_v0 = vmul.f32 0.5, %v534_v57 }
 0x212   : > { %v748_v63 = vmul.f32 0.5, %v2652_v61  ;;  %2657 = vtanh.f32 %v1128_v60  ;;  %v1491_v36 = vpop.f32.mrf.mxu2  ;;  %v2654_v2 = vpop.eup %2653 }
 0x213   : > { %v1492_v1 = vadd.f32 %v3160_v40, %v1491_v36  ;;  %v1255_v14 = vmul.f32 0.5, %v2654_v2  ;;  %2659 = vtanh.f32 %v621_v0 }
 0x214   : > { %v812_v6 = vadd.f32 0.5, %v748_v63 }
 0x215   : > { %v2656_v7 = vpop.eup %2655  ;;  %v1014_v8 = vpop.f32.mrf.mxu1  ;;  %v1636_v9 = vmul.f32 0.5, %v1492_v1  ;;  %v1319_v24 = vadd.f32 0.5, %v1255_v14 }
 0x216   : > { %v1015_v10 = vadd.f32 %v3194_v52, %v1014_v8  ;;  %v535_v11 = vpop.f32.mrf.mxu0  ;;  %v852_v12 = vpack.c.bf16 %v812_v6, %v811_v3  ;;  %v1763_v13 = vmul.f32 0.5, %v2656_v7 }
 0x217   : > { %v536_v15 = vadd.f32 %v3138_v5, %v535_v11  ;;  %2661 = vtanh.f32 %v1636_v9 }
 0x218   : > { %v2658_v16 = vpop.eup %2657  ;;  %1053 = vmatmul.bf16.gmra.mxu1 %v852_v12  ;;  %v1827_v18 = vadd.f32 0.5, %v1763_v13  ;;  %v1129_v21 = vmul.f32 0.5, %v1015_v10 }
 0x219   : > { %v1256_v19 = vmul.f32 0.5, %v2658_v16  ;;  %v622_v20 = vmul.f32 0.5, %v536_v15  ;;  %v2660_v27 = vpop.eup %2659 }
 0x21a   : > { %v1493_v22 = vpop.f32.mrf.mxu2  ;;  %v1886_v23 = vpack.c.bf16 %v1827_v18, %v1826_v17  ;;  %v749_v35 = vmul.f32 0.5, %v2660_v27 }
 0x21b   : > { %v1320_v25 = vadd.f32 0.5, %v1256_v19  ;;  %2663 = vtanh.f32 %v622_v20  ;;  %v1494_v26 = vadd.f32 %v3160_v40, %v1493_v22 }
 0x21c   : > { %2012 = vmatmul.bf16.gmra.mxu3 %v1886_v23  ;;  %2665 = vtanh.f32 %v1129_v21  ;;  %v813_v45 = vadd.f32 0.5, %v749_v35 }
 0x21d   : > { %v1637_v28 = vmul.f32 0.5, %v1494_v26  ;;  %v1016_v29 = vpop.f32.mrf.mxu1  ;;  %v1369_v30 = vpack.c.bf16 %v1320_v25, %v1319_v24  ;;  %v2662_v34 = vpop.eup %2661 }
 0x21e   : > { %v1017_v31 = vadd.f32 %v3194_v52, %v1016_v29  ;;  %v538_v32 = vpop.f32.mrf.mxu0  ;;  %v1764_v46 = vmul.f32 0.5, %v2662_v34 }
 0x21f   : > { %2667 = vtanh.f32 %v1637_v28  ;;  %v539_v33 = vadd.f32 %v3138_v5, %v538_v32  ;;  %1535 = vmatmul.bf16.gmra.mxu2 %v1369_v30 }
 0x220   : > { %v1130_v37 = vmul.f32 0.5, %v1017_v31  ;;  %v1828_v58 = vadd.f32 0.5, %v1764_v46 }
 0x221   : > { %v2664_v38 = vpop.eup %2663  ;;  %v623_v42 = vmul.f32 0.5, %v539_v33 }
 0x222   : > { %v750_v39 = vmul.f32 0.5, %v2664_v38  ;;  %2669 = vtanh.f32 %v1130_v37  ;;  %v1496_v41 = vpop.f32.mrf.mxu2  ;;  %v2666_v44 = vpop.eup %2665 }
 0x223   : > { %v1497_v43 = vadd.f32 %v3160_v40, %v1496_v41  ;;  %v1257_v55 = vmul.f32 0.5, %v2666_v44  ;;  %2671 = vtanh.f32 %v623_v42 }
 0x224   : > { %v814_v47 = vadd.f32 0.5, %v750_v39 }
 0x225   : > { %v2668_v62 = vpop.eup %2667  ;;  %v1019_v48 = vpop.f32.mrf.mxu1  ;;  %v1638_v49 = vmul.f32 0.5, %v1497_v43  ;;  %v1321_v1 = vadd.f32 0.5, %v1257_v55 }
 0x226   : > { %v1020_v50 = vadd.f32 %v3194_v52, %v1019_v48  ;;  %v540_v51 = vpop.f32.mrf.mxu0  ;;  %v853_v53 = vpack.c.bf16 %v814_v47, %v813_v45  ;;  %v1765_v54 = vmul.f32 0.5, %v2668_v62 }
 0x227   : > { %v541_v56 = vadd.f32 %v3138_v5, %v540_v51  ;;  %2673 = vtanh.f32 %v1638_v49 }
 0x228   : > { %v2670_v57 = vpop.eup %2669  ;;  %1058 = vmatmul.bf16.gmra.mxu1 %v853_v53  ;;  %v1829_v59 = vadd.f32 0.5, %v1765_v54  ;;  %v1131_v63 = vmul.f32 0.5, %v1020_v50 }
 0x229   : > { %v1258_v60 = vmul.f32 0.5, %v2670_v57  ;;  %v624_v61 = vmul.f32 0.5, %v541_v56  ;;  %v2672_v4 = vpop.eup %2671 }
 0x22a   : > { %v1498_v36 = vpop.f32.mrf.mxu2  ;;  %v1887_v0 = vpack.c.bf16 %v1829_v59, %v1828_v58  ;;  %v751_v13 = vmul.f32 0.5, %v2672_v4 }
 0x22b   : > { %v1322_v2 = vadd.f32 0.5, %v1258_v60  ;;  %2675 = vtanh.f32 %v624_v61  ;;  %v1499_v3 = vadd.f32 %v3160_v40, %v1498_v36 }
 0x22c   : > { %2017 = vmatmul.bf16.gmra.mxu3 %v1887_v0  ;;  %2677 = vtanh.f32 %v1131_v63  ;;  %v815_v21 = vadd.f32 0.5, %v751_v13 }
 0x22d   : > { %v1639_v6 = vmul.f32 0.5, %v1499_v3  ;;  %v1021_v7 = vpop.f32.mrf.mxu1  ;;  %v1370_v8 = vpack.c.bf16 %v1322_v2, %v1321_v1  ;;  %v2674_v12 = vpop.eup %2673 }
 0x22e   : > { %v1022_v9 = vadd.f32 %v3194_v52, %v1021_v7  ;;  %v543_v10 = vpop.f32.mrf.mxu0  ;;  %v1766_v22 = vmul.f32 0.5, %v2674_v12 }
 0x22f   : > { %2679 = vtanh.f32 %v1639_v6  ;;  %v544_v11 = vadd.f32 %v3138_v5, %v543_v10  ;;  %1540 = vmatmul.bf16.gmra.mxu2 %v1370_v8 }
 0x230   : > { %v1132_v14 = vmul.f32 0.5, %v1022_v9  ;;  %v1830_v34 = vadd.f32 0.5, %v1766_v22 }
 0x231   : > { %v2676_v15 = vpop.eup %2675  ;;  %v625_v18 = vmul.f32 0.5, %v544_v11 }
 0x232   : > { %v752_v16 = vmul.f32 0.5, %v2676_v15  ;;  %2681 = vtanh.f32 %v1132_v14  ;;  %v1501_v17 = vpop.f32.mrf.mxu2  ;;  %v2678_v20 = vpop.eup %2677 }
 0x233   : > { %v1502_v19 = vadd.f32 %v3160_v40, %v1501_v17  ;;  %v1259_v31 = vmul.f32 0.5, %v2678_v20  ;;  %2683 = vtanh.f32 %v625_v18 }
 0x234   : > { %v816_v23 = vadd.f32 0.5, %v752_v16 }
 0x235   : > { %v2680_v24 = vpop.eup %2679  ;;  %v1024_v25 = vpop.f32.mrf.mxu1  ;;  %v1640_v26 = vmul.f32 0.5, %v1502_v19  ;;  %v1323_v43 = vadd.f32 0.5, %v1259_v31 }
 0x236   : > { %v1025_v27 = vadd.f32 %v3194_v52, %v1024_v25  ;;  %v545_v28 = vpop.f32.mrf.mxu0  ;;  %v854_v29 = vpack.c.bf16 %v816_v23, %v815_v21  ;;  %v1767_v30 = vmul.f32 0.5, %v2680_v24 }
 0x237   : > { %v546_v32 = vadd.f32 %v3138_v5, %v545_v28  ;;  %2685 = vtanh.f32 %v1640_v26 }
 0x238   : > { %v2682_v33 = vpop.eup %2681  ;;  %1063 = vmatmul.bf16.gmra.mxu1 %v854_v29  ;;  %v1831_v35 = vadd.f32 0.5, %v1767_v30  ;;  %v1133_v39 = vmul.f32 0.5, %v1025_v27 }
 0x239   : > { %v1260_v37 = vmul.f32 0.5, %v2682_v33  ;;  %v626_v38 = vmul.f32 0.5, %v546_v32  ;;  %v2684_v46 = vpop.eup %2683 }
 0x23a   : > { %v1503_v41 = vpop.f32.mrf.mxu2  ;;  %v1888_v42 = vpack.c.bf16 %v1831_v35, %v1830_v34  ;;  %v753_v54 = vmul.f32 0.5, %v2684_v46 }
 0x23b   : > { %v1324_v44 = vadd.f32 0.5, %v1260_v37  ;;  %2687 = vtanh.f32 %v626_v38  ;;  %v1504_v45 = vadd.f32 %v3160_v40, %v1503_v41 }
 0x23c   : > { %2022 = vmatmul.bf16.gmra.mxu3 %v1888_v42  ;;  %2689 = vtanh.f32 %v1133_v39  ;;  %v817_v63 = vadd.f32 0.5, %v753_v54 }
 0x23d   : > { %v1641_v47 = vmul.f32 0.5, %v1504_v45  ;;  %v1026_v62 = vpop.f32.mrf.mxu1  ;;  %v1371_v48 = vpack.c.bf16 %v1324_v44, %v1323_v43  ;;  %v2686_v53 = vpop.eup %2685 }
 0x23e   : > { %v1027_v49 = vadd.f32 %v3194_v52, %v1026_v62  ;;  %v548_v50 = vpop.f32.mrf.mxu0  ;;  %v1768_v36 = vmul.f32 0.5, %v2686_v53 }
 0x23f   : > { %2691 = vtanh.f32 %v1641_v47  ;;  %v549_v51 = vadd.f32 %v3138_v5, %v548_v50  ;;  %1545 = vmatmul.bf16.gmra.mxu2 %v1371_v48 }
 0x240   : > { %v1134_v55 = vmul.f32 0.5, %v1027_v49  ;;  %v1832_v12 = vadd.f32 0.5, %v1768_v36 }
 0x241   : > { %v2688_v56 = vpop.eup %2687  ;;  %v627_v59 = vmul.f32 0.5, %v549_v51 }
 0x242   : > { %v754_v57 = vmul.f32 0.5, %v2688_v56  ;;  %2693 = vtanh.f32 %v1134_v55  ;;  %v1506_v58 = vpop.f32.mrf.mxu2  ;;  %v2690_v61 = vpop.eup %2689 }
 0x243   : > { %v1507_v60 = vadd.f32 %v3160_v40, %v1506_v58  ;;  %v1261_v9 = vmul.f32 0.5, %v2690_v61  ;;  %2695 = vtanh.f32 %v627_v59 }
 0x244   : > { %v818_v0 = vadd.f32 0.5, %v754_v57 }
 0x245   : > { %v2692_v1 = vpop.eup %2691  ;;  %v1029_v2 = vpop.f32.mrf.mxu1  ;;  %v1642_v3 = vmul.f32 0.5, %v1507_v60  ;;  %v1325_v19 = vadd.f32 0.5, %v1261_v9 }
 0x246   : > { %v1030_v4 = vadd.f32 %v3194_v52, %v1029_v2  ;;  %v550_v6 = vpop.f32.mrf.mxu0  ;;  %v855_v7 = vpack.c.bf16 %v818_v0, %v817_v63  ;;  %v1769_v8 = vmul.f32 0.5, %v2692_v1 }
 0x247   : > { %v551_v10 = vadd.f32 %v3138_v5, %v550_v6  ;;  %2697 = vtanh.f32 %v1642_v3  ;;  %v3247_v6 = vld [vmem:[%s3484_s3] ss:$0 sm:$0xff] }
 0x248   : > { %v2694_v11 = vpop.eup %2693  ;;  %1068 = vmatmul.bf16.gmra.mxu1 %v855_v7  ;;  %v1833_v13 = vadd.f32 0.5, %v1769_v8  ;;  %v1135_v16 = vmul.f32 0.5, %v1030_v4 }
 0x249   : > { %v1262_v14 = vmul.f32 0.5, %v2694_v11  ;;  %v628_v15 = vmul.f32 0.5, %v551_v10  ;;  %v2696_v22 = vpop.eup %2695 }
 0x24a   : > { %v1508_v17 = vpop.f32.mrf.mxu2  ;;  %v1889_v18 = vpack.c.bf16 %v1833_v13, %v1832_v12  ;;  %v755_v30 = vmul.f32 0.5, %v2696_v22 }
 0x24b   : > { %v1326_v20 = vadd.f32 0.5, %v1262_v14  ;;  %2699 = vtanh.f32 %v628_v15  ;;  %v1509_v21 = vadd.f32 %v3160_v40, %v1508_v17 }
 0x24c   : > { %2027 = vmatmul.bf16.gmra.mxu3 %v1889_v18  ;;  %2701 = vtanh.f32 %v1135_v16  ;;  %v819_v39 = vadd.f32 0.5, %v755_v30 }
 0x24d   : > { %v1643_v23 = vmul.f32 0.5, %v1509_v21  ;;  %v1031_v24 = vpop.f32.mrf.mxu1  ;;  %v1372_v25 = vpack.c.bf16 %v1326_v20, %v1325_v19  ;;  %v2698_v29 = vpop.eup %2697 }
 0x24e   : > { %v1032_v26 = vadd.f32 %v3194_v52, %v1031_v24  ;;  %v553_v27 = vpop.f32.mrf.mxu0  ;;  %v1770_v41 = vmul.f32 0.5, %v2698_v29 }
 0x24f   : > { %2703 = vtanh.f32 %v1643_v23  ;;  %v554_v28 = vadd.f32 %v3138_v5, %v553_v27  ;;  %1550 = vmatmul.bf16.gmra.mxu2 %v1372_v25 }
 0x250   : > { %v1136_v31 = vmul.f32 0.5, %v1032_v26  ;;  %v1834_v53 = vadd.f32 0.5, %v1770_v41 }
 0x251   : > { %v2700_v32 = vpop.eup %2699  ;;  %v629_v35 = vmul.f32 0.5, %v554_v28 }
 0x252   : > { %v756_v33 = vmul.f32 0.5, %v2700_v32  ;;  %2705 = vtanh.f32 %v1136_v31  ;;  %v1511_v34 = vpop.f32.mrf.mxu2  ;;  %v2702_v38 = vpop.eup %2701 }
 0x253   : > { %v1512_v37 = vadd.f32 %v3160_v40, %v1511_v34  ;;  %v1263_v49 = vmul.f32 0.5, %v2702_v38  ;;  %2707 = vtanh.f32 %v629_v35 }
 0x254   : > { %v820_v42 = vadd.f32 0.5, %v756_v33 }
 0x255   : > { %v2704_v43 = vpop.eup %2703  ;;  %v1034_v44 = vpop.f32.mrf.mxu1  ;;  %v1644_v45 = vmul.f32 0.5, %v1512_v37  ;;  %v1327_v60 = vadd.f32 0.5, %v1263_v49 }
 0x256   : > { %v1035_v46 = vadd.f32 %v3194_v52, %v1034_v44  ;;  %v555_v47 = vpop.f32.mrf.mxu0  ;;  %v856_v62 = vpack.c.bf16 %v820_v42, %v819_v39  ;;  %v1771_v48 = vmul.f32 0.5, %v2704_v43  ;;  %v3267_v44 = vld [vmem:[%s3484_s3 + $0x2] ss:$0 sm:$0xff] }
 0x257   : > { %v556_v50 = vadd.f32 %v3138_v5, %v555_v47  ;;  %2709 = vtanh.f32 %v1644_v45  ;;  %v3241_v5 = vld [vmem:[%s3484_s3 + $0x3] ss:$0 sm:$0xff] }
 0x258   : > { %v2706_v51 = vpop.eup %2705  ;;  %1073 = vmatmul.bf16.gmra.mxu1 %v856_v62  ;;  %v1835_v54 = vadd.f32 0.5, %v1771_v48  ;;  %v1137_v57 = vmul.f32 0.5, %v1035_v46 }
 0x259   : > { %v1264_v55 = vmul.f32 0.5, %v2706_v51  ;;  %v630_v56 = vmul.f32 0.5, %v556_v50  ;;  %v2708_v36 = vpop.eup %2707 }
 0x25a   : > { %v1513_v58 = vpop.f32.mrf.mxu2  ;;  %v1890_v59 = vpack.c.bf16 %v1835_v54, %v1834_v53  ;;  %v757_v10 = vmul.f32 0.5, %v2708_v36 }
 0x25b   : > { %v1328_v61 = vadd.f32 0.5, %v1264_v55  ;;  %2711 = vtanh.f32 %v630_v56  ;;  %v1514_v63 = vadd.f32 %v3160_v40, %v1513_v58 }
 0x25c   : > { %2032 = vmatmul.bf16.gmra.mxu3 %v1890_v59  ;;  %2713 = vtanh.f32 %v1137_v57  ;;  %v821_v19 = vadd.f32 0.5, %v757_v10 }
 0x25d   : > { %v1645_v0 = vmul.f32 0.5, %v1514_v63  ;;  %v1036_v1 = vpop.f32.mrf.mxu1  ;;  %v1373_v2 = vpack.c.bf16 %v1328_v61, %v1327_v60  ;;  %v2710_v9 = vpop.eup %2709 }
 0x25e   : > { %v1037_v3 = vadd.f32 %v3194_v52, %v1036_v1  ;;  %v558_v4 = vpop.f32.mrf.mxu0  ;;  %v1772_v20 = vmul.f32 0.5, %v2710_v9 }
 0x25f   : > { %2715 = vtanh.f32 %v1645_v0  ;;  %v559_v7 = vadd.f32 %v3247_v6, %v558_v4  ;;  %1555 = vmatmul.bf16.gmra.mxu2 %v1373_v2  ;;  %v1993_v8 = vpop.f32.mrf.mxu3 }
 0x260   : > { %v1138_v11 = vmul.f32 0.5, %v1037_v3  ;;  %v1994_v12 = vadd.f32 %v3241_v5, %v1993_v8  ;;  %v1836_v33 = vadd.f32 0.5, %v1772_v20 }
 0x261   : > { %v2712_v13 = vpop.eup %2711  ;;  %v631_v16 = vmul.f32 0.5, %v559_v7 }
 0x262   : > { %v758_v14 = vmul.f32 0.5, %v2712_v13  ;;  %2717 = vtanh.f32 %v1138_v11  ;;  %2153 = vst [vmem:[%s3255_s18] sm:$0xff] %v1994_v12  ;;  %v1516_v15 = vpop.f32.mrf.mxu2  ;;  %v2714_v18 = vpop.eup %2713 }
 0x263   : > { %v1517_v17 = vadd.f32 %v3160_v40, %v1516_v15  ;;  %v1265_v29 = vmul.f32 0.5, %v2714_v18  ;;  %2719 = vtanh.f32 %v631_v16 }
 0x264   : > { %v822_v21 = vadd.f32 0.5, %v758_v14 }
 0x265   : > { %v2716_v22 = vpop.eup %2715  ;;  %v1039_v23 = vpop.f32.mrf.mxu1  ;;  %v1646_v24 = vmul.f32 0.5, %v1517_v17  ;;  %v1329_v42 = vadd.f32 0.5, %v1265_v29 }
 0x266   : > { %v1040_v25 = vadd.f32 %v3194_v52, %v1039_v23  ;;  %v560_v26 = vpop.f32.mrf.mxu0  ;;  %v857_v27 = vpack.c.bf16 %v822_v21, %v821_v19  ;;  %v1773_v28 = vmul.f32 0.5, %v2716_v22 }
 0x267   : > { %v561_v30 = vadd.f32 %v3247_v6, %v560_v26  ;;  %v1995_v31 = vpop.f32.mrf.mxu3  ;;  %2721 = vtanh.f32 %v1646_v24 }
 0x268   : > { %v2718_v32 = vpop.eup %2717  ;;  %v1996_v40 = vadd.f32 %v3241_v5, %v1995_v31  ;;  %1078 = vmatmul.bf16.gmra.mxu1 %v857_v27  ;;  %v1837_v34 = vadd.f32 0.5, %v1773_v28  ;;  %v1139_v38 = vmul.f32 0.5, %v1040_v25 }
 0x269   : > { %v1266_v35 = vmul.f32 0.5, %v2718_v32  ;;  %v632_v37 = vmul.f32 0.5, %v561_v30  ;;  %v2720_v46 = vpop.eup %2719 }
 0x26a   : > { %2154 = vst [vmem:[%s3255_s18 + $0x8] sm:$0xff] %v1996_v40  ;;  %v1518_v39 = vpop.f32.mrf.mxu2  ;;  %v1891_v41 = vpack.c.bf16 %v1837_v34, %v1836_v33  ;;  %v759_v55 = vmul.f32 0.5, %v2720_v46 }
 0x26b   : > { %v1330_v43 = vadd.f32 0.5, %v1266_v35  ;;  %2723 = vtanh.f32 %v632_v37  ;;  %v1519_v45 = vadd.f32 %v3267_v44, %v1518_v39 }
 0x26c   : > { %2037 = vmatmul.bf16.gmra.mxu3 %v1891_v41  ;;  %2725 = vtanh.f32 %v1139_v38  ;;  %v823_v0 = vadd.f32 0.5, %v759_v55 }
 0x26d   : > { %v1647_v47 = vmul.f32 0.5, %v1519_v45  ;;  %v1041_v62 = vpop.f32.mrf.mxu1  ;;  %v1374_v48 = vpack.c.bf16 %v1330_v43, %v1329_v42  ;;  %v2722_v54 = vpop.eup %2721 }
 0x26e   : > { %v1042_v49 = vadd.f32 %v3194_v52, %v1041_v62  ;;  %v563_v50 = vpop.f32.mrf.mxu0  ;;  %v1774_v1 = vmul.f32 0.5, %v2722_v54 }
 0x26f   : > { %2727 = vtanh.f32 %v1647_v47  ;;  %v564_v51 = vadd.f32 %v3247_v6, %v563_v50  ;;  %1560 = vmatmul.bf16.gmra.mxu2 %v1374_v48  ;;  %v1998_v53 = vpop.f32.mrf.mxu3 }
 0x270   : > { %v1140_v56 = vmul.f32 0.5, %v1042_v49  ;;  %v1999_v57 = vadd.f32 %v3241_v5, %v1998_v53  ;;  %v1838_v17 = vadd.f32 0.5, %v1774_v1 }
 0x271   : > { %v2724_v58 = vpop.eup %2723  ;;  %v633_v61 = vmul.f32 0.5, %v564_v51 }
 0x272   : > { %v760_v59 = vmul.f32 0.5, %v2724_v58  ;;  %2729 = vtanh.f32 %v1140_v56  ;;  %2155 = vst [vmem:[%s3255_s18 + $0x10] sm:$0xff] %v1999_v57  ;;  %v1521_v60 = vpop.f32.mrf.mxu2  ;;  %v2726_v36 = vpop.eup %2725 }
 0x273   : > { %v1522_v63 = vadd.f32 %v3267_v44, %v1521_v60  ;;  %v1267_v12 = vmul.f32 0.5, %v2726_v36  ;;  %2731 = vtanh.f32 %v633_v61 }
 0x274   : > { %v824_v2 = vadd.f32 0.5, %v760_v59 }
 0x275   : > { %v2728_v3 = vpop.eup %2727  ;;  %v1044_v4 = vpop.f32.mrf.mxu1  ;;  %v1648_v7 = vmul.f32 0.5, %v1522_v63  ;;  %v1331_v24 = vadd.f32 0.5, %v1267_v12 }
 0x276   : > { %v1045_v8 = vadd.f32 %v3194_v52, %v1044_v4  ;;  %v565_v9 = vpop.f32.mrf.mxu0  ;;  %v858_v10 = vpack.c.bf16 %v824_v2, %v823_v0  ;;  %v1775_v11 = vmul.f32 0.5, %v2728_v3 }
 0x277   : > { %v566_v13 = vadd.f32 %v3247_v6, %v565_v9  ;;  %v2000_v14 = vpop.f32.mrf.mxu3  ;;  %2733 = vtanh.f32 %v1648_v7 }
 0x278   : > { %v2730_v15 = vpop.eup %2729  ;;  %v2001_v16 = vadd.f32 %v3241_v5, %v2000_v14  ;;  %1083 = vmatmul.bf16.gmra.mxu1 %v858_v10  ;;  %v1839_v18 = vadd.f32 0.5, %v1775_v11  ;;  %v1141_v21 = vmul.f32 0.5, %v1045_v8 }
 0x279   : > { %v1268_v19 = vmul.f32 0.5, %v2730_v15  ;;  %v634_v20 = vmul.f32 0.5, %v566_v13  ;;  %v2732_v27 = vpop.eup %2731 }
 0x27a   : > { %2156 = vst [vmem:[%s3255_s18 + $0x18] sm:$0xff] %v2001_v16  ;;  %v1523_v22 = vpop.f32.mrf.mxu2  ;;  %v1892_v23 = vpack.c.bf16 %v1839_v18, %v1838_v17  ;;  %v761_v35 = vmul.f32 0.5, %v2732_v27 }
 0x27b   : > { %v1332_v25 = vadd.f32 0.5, %v1268_v19  ;;  %2735 = vtanh.f32 %v634_v20  ;;  %v1524_v26 = vadd.f32 %v3267_v44, %v1523_v22 }
 0x27c   : > { %2042 = vmatmul.bf16.gmra.mxu3 %v1892_v23  ;;  %2737 = vtanh.f32 %v1141_v21  ;;  %v825_v47 = vadd.f32 0.5, %v761_v35 }
 0x27d   : > { %v1649_v28 = vmul.f32 0.5, %v1524_v26  ;;  %v1046_v29 = vpop.f32.mrf.mxu1  ;;  %v1375_v30 = vpack.c.bf16 %v1332_v25, %v1331_v24  ;;  %v2734_v34 = vpop.eup %2733 }
 0x27e   : > { %v1047_v31 = vadd.f32 %v3194_v52, %v1046_v29  ;;  %v568_v32 = vpop.f32.mrf.mxu0  ;;  %v1776_v62 = vmul.f32 0.5, %v2734_v34 }
 0x27f   : > { %2739 = vtanh.f32 %v1649_v28  ;;  %v569_v40 = vadd.f32 %v3247_v6, %v568_v32  ;;  %1565 = vmatmul.bf16.gmra.mxu2 %v1375_v30  ;;  %v2003_v33 = vpop.f32.mrf.mxu3 }
 0x280   : > { %v1142_v37 = vmul.f32 0.5, %v1047_v31  ;;  %v2004_v38 = vadd.f32 %v3241_v5, %v2003_v33  ;;  %v1840_v63 = vadd.f32 0.5, %v1776_v62 }
 0x281   : > { %v2736_v39 = vpop.eup %2735  ;;  %v635_v43 = vmul.f32 0.5, %v569_v40 }
 0x282   : > { %v762_v41 = vmul.f32 0.5, %v2736_v39  ;;  %2741 = vtanh.f32 %v1142_v37  ;;  %2157 = vst [vmem:[%s3255_s18 + $0x20] sm:$0xff] %v2004_v38  ;;  %v1526_v42 = vpop.f32.mrf.mxu2  ;;  %v2738_v46 = vpop.eup %2737 }
 0x283   : > { %v1527_v45 = vadd.f32 %v3267_v44, %v1526_v42  ;;  %v1269_v57 = vmul.f32 0.5, %v2738_v46  ;;  %2743 = vtanh.f32 %v635_v43 }
 0x284   : > { %v826_v48 = vadd.f32 0.5, %v762_v41 }
 0x285   : > { %v2740_v49 = vpop.eup %2739  ;;  %v1049_v50 = vpop.f32.mrf.mxu1  ;;  %v1650_v51 = vmul.f32 0.5, %v1527_v45  ;;  %v1333_v7 = vadd.f32 0.5, %v1269_v57 }
 0x286   : > { %v1050_v53 = vadd.f32 %v3194_v52, %v1049_v50  ;;  %v570_v54 = vpop.f32.mrf.mxu0  ;;  %v859_v55 = vpack.c.bf16 %v826_v48, %v825_v47  ;;  %v1777_v56 = vmul.f32 0.5, %v2740_v49  ;;  %v3301_v49 = vld [vmem:[%s3484_s3 + $0x1] ss:$0 sm:$0xff] }
 0x287   : > { %v571_v58 = vadd.f32 %v3247_v6, %v570_v54  ;;  %v2005_v59 = vpop.f32.mrf.mxu3  ;;  %2745 = vtanh.f32 %v1650_v51 }
 0x288   : > { %v2742_v60 = vpop.eup %2741  ;;  %v2006_v61 = vadd.f32 %v3241_v5, %v2005_v59  ;;  %1088 = vmatmul.bf16.gmra.mxu1 %v859_v55  ;;  %v1841_v36 = vadd.f32 0.5, %v1777_v56  ;;  %v1143_v2 = vmul.f32 0.5, %v1050_v53 }
 0x289   : > { %v1270_v0 = vmul.f32 0.5, %v2742_v60  ;;  %v636_v1 = vmul.f32 0.5, %v571_v58  ;;  %v2744_v6 = vpop.eup %2743 }
 0x28a   : > { %2158 = vst [vmem:[%s3255_s18 + $0x28] sm:$0xff] %v2006_v61  ;;  %v1528_v3 = vpop.f32.mrf.mxu2  ;;  %v1893_v4 = vpack.c.bf16 %v1841_v36, %v1840_v63  ;;  %v763_v16 = vmul.f32 0.5, %v2744_v6 }
 0x28b   : > { %v1334_v8 = vadd.f32 0.5, %v1270_v0  ;;  %2747 = vtanh.f32 %v636_v1  ;;  %v1529_v9 = vadd.f32 %v3267_v44, %v1528_v3 }
 0x28c   : > { %2047 = vmatmul.bf16.gmra.mxu3 %v1893_v4  ;;  %2749 = vtanh.f32 %v1143_v2  ;;  %v827_v24 = vadd.f32 0.5, %v763_v16 }
 0x28d   : > { %v1651_v10 = vmul.f32 0.5, %v1529_v9  ;;  %v1051_v11 = vpop.f32.mrf.mxu1  ;;  %v1376_v12 = vpack.c.bf16 %v1334_v8, %v1333_v7  ;;  %v2746_v15 = vpop.eup %2745 }
 0x28e   : > { %v1052_v13 = vadd.f32 %v3194_v52, %v1051_v11  ;;  %v1778_v25 = vmul.f32 0.5, %v2746_v15 }
 0x28f   : > { %2751 = vtanh.f32 %v1651_v10  ;;  %1570 = vmatmul.bf16.gmra.mxu2 %v1376_v12  ;;  %v2008_v14 = vpop.f32.mrf.mxu3 }
 0x290   : > { %v1144_v17 = vmul.f32 0.5, %v1052_v13  ;;  %v2009_v18 = vadd.f32 %v3241_v5, %v2008_v14  ;;  %v1842_v35 = vadd.f32 0.5, %v1778_v25 }
 0x291   : > { %v2748_v19 = vpop.eup %2747 }
 0x292   : > { %v764_v20 = vmul.f32 0.5, %v2748_v19  ;;  %2753 = vtanh.f32 %v1144_v17  ;;  %2159 = vst [vmem:[%s3255_s18 + $0x30] sm:$0xff] %v2009_v18  ;;  %v1531_v21 = vpop.f32.mrf.mxu2  ;;  %v2750_v23 = vpop.eup %2749 }
 0x293   : > { %v1532_v22 = vadd.f32 %v3267_v44, %v1531_v21  ;;  %v1271_v32 = vmul.f32 0.5, %v2750_v23 }
 0x294   : > { %v828_v26 = vadd.f32 0.5, %v764_v20 }
 0x295   : > { %v2752_v27 = vpop.eup %2751  ;;  %v1054_v28 = vpop.f32.mrf.mxu1  ;;  %v1652_v40 = vmul.f32 0.5, %v1532_v22  ;;  %v1335_v45 = vadd.f32 0.5, %v1271_v32 }
 0x296   : > { %v1779_v29 = vmul.f32 0.5, %v2752_v27  ;;  %v1055_v30 = vadd.f32 %v3194_v52, %v1054_v28  ;;  %v860_v31 = vpack.c.bf16 %v828_v26, %v827_v24 }
 0x297   : > { %v2010_v33 = vpop.f32.mrf.mxu3  ;;  %2755 = vtanh.f32 %v1652_v40 }
 0x298   : > { %v2754_v34 = vpop.eup %2753  ;;  %v1843_v37 = vadd.f32 0.5, %v1779_v29  ;;  %v2011_v38 = vadd.f32 %v3241_v5, %v2010_v33  ;;  %1093 = vmatmul.bf16.gmra.mxu1 %v860_v31  ;;  %v1145_v41 = vmul.f32 0.5, %v1055_v30 }
 0x299   : > { %v1272_v39 = vmul.f32 0.5, %v2754_v34 }
 0x29a   : > { %2160 = vst [vmem:[%s3255_s18 + $0x38] sm:$0xff] %v2011_v38  ;;  %v1533_v42 = vpop.f32.mrf.mxu2  ;;  %v1894_v43 = vpack.c.bf16 %v1843_v37, %v1842_v35  ;;  %2757 = vtanh.f32 %v1145_v41 }
 0x29b   : > { %v1336_v46 = vadd.f32 0.5, %v1272_v39  ;;  %v1534_v52 = vadd.f32 %v3267_v44, %v1533_v42 }
 0x29c   : > { %2052 = vmatmul.bf16.gmra.mxu3 %v1894_v43 }
 0x29d   : > { %v1653_v47 = vmul.f32 0.5, %v1534_v52  ;;  %v1056_v62 = vpop.f32.mrf.mxu1  ;;  %v1377_v48 = vpack.c.bf16 %v1336_v46, %v1335_v45  ;;  %v2756_v55 = vpop.eup %2755 }
 0x29e   : > { %v1057_v50 = vadd.f32 %v3301_v49, %v1056_v62  ;;  %v1780_v59 = vmul.f32 0.5, %v2756_v55 }
 0x29f   : > { %2759 = vtanh.f32 %v1653_v47  ;;  %1575 = vmatmul.bf16.gmra.mxu2 %v1377_v48  ;;  %v2013_v51 = vpop.f32.mrf.mxu3 }
 0x2a0   : > { %v1146_v53 = vmul.f32 0.5, %v1057_v50  ;;  %v2014_v54 = vadd.f32 %v3241_v5, %v2013_v51  ;;  %v2758_v58 = vpop.eup %2757  ;;  %v1844_v4 = vadd.f32 0.5, %v1780_v59 }
 0x2a1   : > { %v1273_v0 = vmul.f32 0.5, %v2758_v58 }
 0x2a2   : > { %2761 = vtanh.f32 %v1146_v53  ;;  %2161 = vst [vmem:[%s3255_s18 + $0x40] sm:$0xff] %v2014_v54  ;;  %v1536_v56 = vpop.f32.mrf.mxu2 }
 0x2a3   : > { %v1537_v57 = vadd.f32 %v3267_v44, %v1536_v56  ;;  %v1337_v12 = vadd.f32 0.5, %v1273_v0 }
 0x2a5   : > { %v2760_v60 = vpop.eup %2759  ;;  %v1059_v61 = vpop.f32.mrf.mxu1  ;;  %v1654_v1 = vmul.f32 0.5, %v1537_v57 }
 0x2a6   : > { %v1781_v63 = vmul.f32 0.5, %v2760_v60  ;;  %v1060_v36 = vadd.f32 %v3301_v49, %v1059_v61 }
 0x2a7   : > { %v2015_v2 = vpop.f32.mrf.mxu3  ;;  %2763 = vtanh.f32 %v1654_v1 }
 0x2a8   : > { %v2762_v3 = vpop.eup %2761  ;;  %v1845_v7 = vadd.f32 0.5, %v1781_v63  ;;  %v2016_v8 = vadd.f32 %v3241_v5, %v2015_v2  ;;  %v1147_v6 = vmul.f32 0.5, %v1060_v36 }
 0x2a9   : > { %v1274_v9 = vmul.f32 0.5, %v2762_v3 }
 0x2aa   : > { %2162 = vst [vmem:[%s3255_s18 + $0x48] sm:$0xff] %v2016_v8  ;;  %v1538_v10 = vpop.f32.mrf.mxu2  ;;  %v1895_v11 = vpack.c.bf16 %v1845_v7, %v1844_v4  ;;  %2765 = vtanh.f32 %v1147_v6 }
 0x2ab   : > { %v1338_v13 = vadd.f32 0.5, %v1274_v9  ;;  %v1539_v14 = vadd.f32 %v3267_v44, %v1538_v10 }
 0x2ac   : > { %2057 = vmatmul.bf16.gmra.mxu3 %v1895_v11 }
 0x2ad   : > { %v1655_v15 = vmul.f32 0.5, %v1539_v14  ;;  %v1061_v16 = vpop.f32.mrf.mxu1  ;;  %v1378_v17 = vpack.c.bf16 %v1338_v13, %v1337_v12  ;;  %v2764_v22 = vpop.eup %2763 }
 0x2ae   : > { %v1062_v18 = vadd.f32 %v3301_v49, %v1061_v16  ;;  %v1782_v26 = vmul.f32 0.5, %v2764_v22 }
 0x2af   : > { %2767 = vtanh.f32 %v1655_v15  ;;  %1580 = vmatmul.bf16.gmra.mxu2 %v1378_v17  ;;  %v2018_v19 = vpop.f32.mrf.mxu3 }
 0x2b0   : > { %v1148_v20 = vmul.f32 0.5, %v1062_v18  ;;  %v2019_v21 = vadd.f32 %v3241_v5, %v2018_v19  ;;  %v2766_v25 = vpop.eup %2765  ;;  %v1846_v34 = vadd.f32 0.5, %v1782_v26 }
 0x2b1   : > { %v1275_v31 = vmul.f32 0.5, %v2766_v25 }
 0x2b2   : > { %2769 = vtanh.f32 %v1148_v20  ;;  %2163 = vst [vmem:[%s3255_s18 + $0x50] sm:$0xff] %v2019_v21  ;;  %v1541_v23 = vpop.f32.mrf.mxu2 }
 0x2b3   : > { %v1542_v24 = vadd.f32 %v3267_v44, %v1541_v23  ;;  %v1339_v43 = vadd.f32 0.5, %v1275_v31 }
 0x2b5   : > { %v2768_v27 = vpop.eup %2767  ;;  %v1064_v28 = vpop.f32.mrf.mxu1  ;;  %v1656_v32 = vmul.f32 0.5, %v1542_v24 }
 0x2b6   : > { %v1783_v29 = vmul.f32 0.5, %v2768_v27  ;;  %v1065_v30 = vadd.f32 %v3301_v49, %v1064_v28 }
 0x2b7   : > { %v2020_v40 = vpop.f32.mrf.mxu3  ;;  %2771 = vtanh.f32 %v1656_v32 }
 0x2b8   : > { %v2770_v33 = vpop.eup %2769  ;;  %v1847_v35 = vadd.f32 0.5, %v1783_v29  ;;  %v2021_v37 = vadd.f32 %v3241_v5, %v2020_v40  ;;  %v1149_v39 = vmul.f32 0.5, %v1065_v30 }
 0x2b9   : > { %v1276_v38 = vmul.f32 0.5, %v2770_v33 }
 0x2ba   : > { %2164 = vst [vmem:[%s3255_s18 + $0x58] sm:$0xff] %v2021_v37  ;;  %v1543_v41 = vpop.f32.mrf.mxu2  ;;  %v1896_v42 = vpack.c.bf16 %v1847_v35, %v1846_v34  ;;  %2773 = vtanh.f32 %v1149_v39 }
 0x2bb   : > { %v1340_v45 = vadd.f32 0.5, %v1276_v38  ;;  %v1544_v46 = vadd.f32 %v3267_v44, %v1543_v41 }
 0x2bc   : > { %2062 = vmatmul.bf16.gmra.mxu3 %v1896_v42 }
 0x2bd   : > { %v1657_v52 = vmul.f32 0.5, %v1544_v46  ;;  %v1066_v47 = vpop.f32.mrf.mxu1  ;;  %v1379_v62 = vpack.c.bf16 %v1340_v45, %v1339_v43  ;;  %v2772_v54 = vpop.eup %2771 }
 0x2be   : > { %v1067_v48 = vadd.f32 %v3301_v49, %v1066_v47  ;;  %v1784_v58 = vmul.f32 0.5, %v2772_v54 }
 0x2bf   : > { %2775 = vtanh.f32 %v1657_v52  ;;  %1585 = vmatmul.bf16.gmra.mxu2 %v1379_v62  ;;  %v2023_v50 = vpop.f32.mrf.mxu3 }
 0x2c0   : > { %v1150_v51 = vmul.f32 0.5, %v1067_v48  ;;  %v2024_v53 = vadd.f32 %v3241_v5, %v2023_v50  ;;  %v2774_v57 = vpop.eup %2773  ;;  %v1848_v3 = vadd.f32 0.5, %v1784_v58 }
 0x2c1   : > { %v1277_v36 = vmul.f32 0.5, %v2774_v57 }
 0x2c2   : > { %2777 = vtanh.f32 %v1150_v51  ;;  %2165 = vst [vmem:[%s3255_s18 + $0x60] sm:$0xff] %v2024_v53  ;;  %v1546_v55 = vpop.f32.mrf.mxu2 }
 0x2c3   : > { %v1547_v56 = vadd.f32 %v3267_v44, %v1546_v55  ;;  %v1341_v11 = vadd.f32 0.5, %v1277_v36 }
 0x2c5   : > { %v2776_v59 = vpop.eup %2775  ;;  %v1069_v60 = vpop.f32.mrf.mxu1  ;;  %v1658_v0 = vmul.f32 0.5, %v1547_v56 }
 0x2c6   : > { %v1785_v61 = vmul.f32 0.5, %v2776_v59  ;;  %v1070_v63 = vadd.f32 %v3301_v49, %v1069_v60 }
 0x2c7   : > { %v2025_v1 = vpop.f32.mrf.mxu3  ;;  %2779 = vtanh.f32 %v1658_v0 }
 0x2c8   : > { %v2778_v2 = vpop.eup %2777  ;;  %v1849_v4 = vadd.f32 0.5, %v1785_v61  ;;  %v2026_v7 = vadd.f32 %v3241_v5, %v2025_v1  ;;  %v1151_v9 = vmul.f32 0.5, %v1070_v63 }
 0x2c9   : > { %v1278_v8 = vmul.f32 0.5, %v2778_v2 }
 0x2ca   : > { %2166 = vst [vmem:[%s3255_s18 + $0x68] sm:$0xff] %v2026_v7  ;;  %v1548_v6 = vpop.f32.mrf.mxu2  ;;  %v1897_v10 = vpack.c.bf16 %v1849_v4, %v1848_v3  ;;  %2781 = vtanh.f32 %v1151_v9 }
 0x2cb   : > { %v1342_v12 = vadd.f32 0.5, %v1278_v8  ;;  %v1549_v13 = vadd.f32 %v3267_v44, %v1548_v6 }
 0x2cc   : > { %2067 = vmatmul.bf16.gmra.mxu3 %v1897_v10 }
 0x2cd   : > { %v1659_v14 = vmul.f32 0.5, %v1549_v13  ;;  %v1071_v15 = vpop.f32.mrf.mxu1  ;;  %v1380_v16 = vpack.c.bf16 %v1342_v12, %v1341_v11  ;;  %v2780_v21 = vpop.eup %2779 }
 0x2ce   : > { %v1072_v17 = vadd.f32 %v3301_v49, %v1071_v15  ;;  %v1786_v25 = vmul.f32 0.5, %v2780_v21 }
 0x2cf   : > { %2783 = vtanh.f32 %v1659_v14  ;;  %1590 = vmatmul.bf16.gmra.mxu2 %v1380_v16  ;;  %v2028_v18 = vpop.f32.mrf.mxu3 }
 0x2d0   : > { %v1152_v19 = vmul.f32 0.5, %v1072_v17  ;;  %v2029_v20 = vadd.f32 %v3241_v5, %v2028_v18  ;;  %v2782_v24 = vpop.eup %2781  ;;  %v1850_v33 = vadd.f32 0.5, %v1786_v25 }
 0x2d1   : > { %v1279_v30 = vmul.f32 0.5, %v2782_v24 }
 0x2d2   : > { %2785 = vtanh.f32 %v1152_v19  ;;  %2167 = vst [vmem:[%s3255_s18 + $0x70] sm:$0xff] %v2029_v20  ;;  %v1551_v22 = vpop.f32.mrf.mxu2 }
 0x2d3   : > { %v1552_v23 = vadd.f32 %v3267_v44, %v1551_v22  ;;  %v1343_v42 = vadd.f32 0.5, %v1279_v30 }
 0x2d5   : > { %v2784_v26 = vpop.eup %2783  ;;  %v1074_v27 = vpop.f32.mrf.mxu1  ;;  %v1660_v31 = vmul.f32 0.5, %v1552_v23 }
 0x2d6   : > { %v1787_v28 = vmul.f32 0.5, %v2784_v26  ;;  %v1075_v29 = vadd.f32 %v3301_v49, %v1074_v27 }
 0x2d7   : > { %v2030_v32 = vpop.f32.mrf.mxu3  ;;  %2787 = vtanh.f32 %v1660_v31 }
 0x2d8   : > { %v2786_v40 = vpop.eup %2785  ;;  %v1851_v34 = vadd.f32 0.5, %v1787_v28  ;;  %v2031_v35 = vadd.f32 %v3241_v5, %v2030_v32  ;;  %v1153_v38 = vmul.f32 0.5, %v1075_v29 }
 0x2d9   : > { %v1280_v37 = vmul.f32 0.5, %v2786_v40 }
 0x2da   : > { %2168 = vst [vmem:[%s3255_s18 + $0x78] sm:$0xff] %v2031_v35  ;;  %v1553_v39 = vpop.f32.mrf.mxu2  ;;  %v1898_v41 = vpack.c.bf16 %v1851_v34, %v1850_v33  ;;  %2789 = vtanh.f32 %v1153_v38 }
 0x2db   : > { %v1344_v43 = vadd.f32 0.5, %v1280_v37  ;;  %v1554_v45 = vadd.f32 %v3267_v44, %v1553_v39 }
 0x2dc   : > { %2072 = vmatmul.bf16.gmra.mxu3 %v1898_v41 }
 0x2dd   : > { %v1661_v46 = vmul.f32 0.5, %v1554_v45  ;;  %v1076_v52 = vpop.f32.mrf.mxu1  ;;  %v1381_v47 = vpack.c.bf16 %v1344_v43, %v1343_v42  ;;  %v2788_v53 = vpop.eup %2787 }
 0x2de   : > { %v1077_v62 = vadd.f32 %v3301_v49, %v1076_v52  ;;  %v1788_v57 = vmul.f32 0.5, %v2788_v53 }
 0x2df   : > { %2791 = vtanh.f32 %v1661_v46  ;;  %1595 = vmatmul.bf16.gmra.mxu2 %v1381_v47  ;;  %v2033_v48 = vpop.f32.mrf.mxu3 }
 0x2e0   : > { %v1154_v50 = vmul.f32 0.5, %v1077_v62  ;;  %v2034_v51 = vadd.f32 %v3241_v5, %v2033_v48  ;;  %v2790_v56 = vpop.eup %2789  ;;  %v1852_v2 = vadd.f32 0.5, %v1788_v57 }
 0x2e1   : > { %v1281_v63 = vmul.f32 0.5, %v2790_v56 }
 0x2e2   : > { %2793 = vtanh.f32 %v1154_v50  ;;  %2169 = vst [vmem:[%s3255_s18 + $0x80] sm:$0xff] %v2034_v51  ;;  %v1556_v54 = vpop.f32.mrf.mxu2 }
 0x2e3   : > { %v1557_v55 = vadd.f32 %v3267_v44, %v1556_v54  ;;  %v1345_v10 = vadd.f32 0.5, %v1281_v63 }
 0x2e5   : > { %v2792_v58 = vpop.eup %2791  ;;  %v1079_v59 = vpop.f32.mrf.mxu1  ;;  %v1662_v36 = vmul.f32 0.5, %v1557_v55 }
 0x2e6   : > { %v1789_v60 = vmul.f32 0.5, %v2792_v58  ;;  %v1080_v61 = vadd.f32 %v3301_v49, %v1079_v59 }
 0x2e7   : > { %v2035_v0 = vpop.f32.mrf.mxu3  ;;  %2795 = vtanh.f32 %v1662_v36 }
 0x2e8   : > { %v2794_v1 = vpop.eup %2793  ;;  %v1853_v3 = vadd.f32 0.5, %v1789_v60  ;;  %v2036_v4 = vadd.f32 %v3241_v5, %v2035_v0  ;;  %v1155_v8 = vmul.f32 0.5, %v1080_v61 }
 0x2e9   : > { %v1282_v7 = vmul.f32 0.5, %v2794_v1 }
 0x2ea   : > { %2170 = vst [vmem:[%s3255_s18 + $0x88] sm:$0xff] %v2036_v4  ;;  %v1558_v9 = vpop.f32.mrf.mxu2  ;;  %v1899_v6 = vpack.c.bf16 %v1853_v3, %v1852_v2  ;;  %2797 = vtanh.f32 %v1155_v8 }
 0x2eb   : > { %v1346_v11 = vadd.f32 0.5, %v1282_v7  ;;  %v1559_v12 = vadd.f32 %v3267_v44, %v1558_v9 }
 0x2ec   : > { %2077 = vmatmul.bf16.gmra.mxu3 %v1899_v6 }
 0x2ed   : > { %v1663_v13 = vmul.f32 0.5, %v1559_v12  ;;  %v1081_v14 = vpop.f32.mrf.mxu1  ;;  %v1382_v15 = vpack.c.bf16 %v1346_v11, %v1345_v10  ;;  %v2796_v20 = vpop.eup %2795 }
 0x2ee   : > { %v1082_v16 = vadd.f32 %v3301_v49, %v1081_v14  ;;  %v1790_v24 = vmul.f32 0.5, %v2796_v20 }
 0x2ef   : > { %2799 = vtanh.f32 %v1663_v13  ;;  %1600 = vmatmul.bf16.gmra.mxu2 %v1382_v15  ;;  %v2038_v17 = vpop.f32.mrf.mxu3 }
 0x2f0   : > { %v1156_v18 = vmul.f32 0.5, %v1082_v16  ;;  %v2039_v19 = vadd.f32 %v3241_v5, %v2038_v17  ;;  %v2798_v23 = vpop.eup %2797  ;;  %v1854_v40 = vadd.f32 0.5, %v1790_v24 }
 0x2f1   : > { %v1283_v29 = vmul.f32 0.5, %v2798_v23 }
 0x2f2   : > { %2801 = vtanh.f32 %v1156_v18  ;;  %2171 = vst [vmem:[%s3255_s18 + $0x90] sm:$0xff] %v2039_v19  ;;  %v1561_v21 = vpop.f32.mrf.mxu2 }
 0x2f3   : > { %v1562_v22 = vadd.f32 %v3267_v44, %v1561_v21  ;;  %v1347_v41 = vadd.f32 0.5, %v1283_v29 }
 0x2f5   : > { %v2800_v25 = vpop.eup %2799  ;;  %v1084_v26 = vpop.f32.mrf.mxu1  ;;  %v1664_v30 = vmul.f32 0.5, %v1562_v22 }
 0x2f6   : > { %v1791_v27 = vmul.f32 0.5, %v2800_v25  ;;  %v1085_v28 = vadd.f32 %v3301_v49, %v1084_v26 }
 0x2f7   : > { %v2040_v31 = vpop.f32.mrf.mxu3  ;;  %2803 = vtanh.f32 %v1664_v30 }
 0x2f8   : > { %v2802_v32 = vpop.eup %2801  ;;  %v1855_v33 = vadd.f32 0.5, %v1791_v27  ;;  %v2041_v34 = vadd.f32 %v3241_v5, %v2040_v31  ;;  %v1157_v37 = vmul.f32 0.5, %v1085_v28 }
 0x2f9   : > { %v1284_v35 = vmul.f32 0.5, %v2802_v32 }
 0x2fa   : > { %2172 = vst [vmem:[%s3255_s18 + $0x98] sm:$0xff] %v2041_v34  ;;  %v1563_v38 = vpop.f32.mrf.mxu2  ;;  %v1900_v39 = vpack.c.bf16 %v1855_v33, %v1854_v40  ;;  %2805 = vtanh.f32 %v1157_v37 }
 0x2fb   : > { %v1348_v42 = vadd.f32 0.5, %v1284_v35  ;;  %v1564_v43 = vadd.f32 %v3267_v44, %v1563_v38 }
 0x2fc   : > { %2082 = vmatmul.bf16.gmra.mxu3 %v1900_v39 }
 0x2fd   : > { %v1665_v45 = vmul.f32 0.5, %v1564_v43  ;;  %v1086_v46 = vpop.f32.mrf.mxu1  ;;  %v1383_v52 = vpack.c.bf16 %v1348_v42, %v1347_v41  ;;  %v2804_v51 = vpop.eup %2803 }
 0x2fe   : > { %v1087_v47 = vadd.f32 %v3301_v49, %v1086_v46  ;;  %v1792_v56 = vmul.f32 0.5, %v2804_v51 }
 0x2ff   : > { %2807 = vtanh.f32 %v1665_v45  ;;  %1605 = vmatmul.bf16.gmra.mxu2 %v1383_v52  ;;  %v2043_v62 = vpop.f32.mrf.mxu3 }
 0x300   : > { %v1158_v48 = vmul.f32 0.5, %v1087_v47  ;;  %v2044_v50 = vadd.f32 %v3241_v5, %v2043_v62  ;;  %v2806_v55 = vpop.eup %2805  ;;  %v1856_v1 = vadd.f32 0.5, %v1792_v56  ;;  %v3371_v62 = vld [vmem:[%s3484_s3 + $0x3] ss:$0 sm:$0xff] }
 0x301   : > { %v1285_v61 = vmul.f32 0.5, %v2806_v55 }
 0x302   : > { %2809 = vtanh.f32 %v1158_v48  ;;  %2173 = vst [vmem:[%s3255_s18 + $0xa0] sm:$0xff] %v2044_v50  ;;  %v1566_v53 = vpop.f32.mrf.mxu2 }
 0x303   : > { %v1567_v54 = vadd.f32 %v3267_v44, %v1566_v53  ;;  %v1349_v6 = vadd.f32 0.5, %v1285_v61 }
 0x305   : > { %v2808_v57 = vpop.eup %2807  ;;  %v1089_v58 = vpop.f32.mrf.mxu1  ;;  %v1666_v63 = vmul.f32 0.5, %v1567_v54 }
 0x306   : > { %v1793_v59 = vmul.f32 0.5, %v2808_v57  ;;  %v1090_v60 = vadd.f32 %v3301_v49, %v1089_v58 }
 0x307   : > { %v2045_v36 = vpop.f32.mrf.mxu3  ;;  %2811 = vtanh.f32 %v1666_v63 }
 0x308   : > { %v2810_v0 = vpop.eup %2809  ;;  %v1857_v2 = vadd.f32 0.5, %v1793_v59  ;;  %v2046_v3 = vadd.f32 %v3241_v5, %v2045_v36  ;;  %v1159_v7 = vmul.f32 0.5, %v1090_v60 }
 0x309   : > { %v1286_v4 = vmul.f32 0.5, %v2810_v0 }
 0x30a   : > { %2174 = vst [vmem:[%s3255_s18 + $0xa8] sm:$0xff] %v2046_v3  ;;  %v1568_v8 = vpop.f32.mrf.mxu2  ;;  %v1901_v9 = vpack.c.bf16 %v1857_v2, %v1856_v1  ;;  %2813 = vtanh.f32 %v1159_v7 }
 0x30b   : > { %v1350_v10 = vadd.f32 0.5, %v1286_v4  ;;  %v1569_v11 = vadd.f32 %v3267_v44, %v1568_v8 }
 0x30c   : > { %2087 = vmatmul.bf16.gmra.mxu3 %v1901_v9 }
 0x30d   : > { %v1667_v12 = vmul.f32 0.5, %v1569_v11  ;;  %v1091_v13 = vpop.f32.mrf.mxu1  ;;  %v1384_v14 = vpack.c.bf16 %v1350_v10, %v1349_v6  ;;  %v2812_v19 = vpop.eup %2811 }
 0x30e   : > { %v1092_v15 = vadd.f32 %v3301_v49, %v1091_v13  ;;  %v1794_v23 = vmul.f32 0.5, %v2812_v19 }
 0x30f   : > { %2815 = vtanh.f32 %v1667_v12  ;;  %1610 = vmatmul.bf16.gmra.mxu2 %v1384_v14  ;;  %v2048_v16 = vpop.f32.mrf.mxu3 }
 0x310   : > { %v1160_v17 = vmul.f32 0.5, %v1092_v15  ;;  %v2049_v18 = vadd.f32 %v3241_v5, %v2048_v16  ;;  %v2814_v22 = vpop.eup %2813  ;;  %v1858_v32 = vadd.f32 0.5, %v1794_v23 }
 0x311   : > { %v1287_v28 = vmul.f32 0.5, %v2814_v22 }
 0x312   : > { %2817 = vtanh.f32 %v1160_v17  ;;  %2175 = vst [vmem:[%s3255_s18 + $0xb0] sm:$0xff] %v2049_v18  ;;  %v1571_v20 = vpop.f32.mrf.mxu2 }
 0x313   : > { %v1572_v21 = vadd.f32 %v3267_v44, %v1571_v20  ;;  %v1351_v39 = vadd.f32 0.5, %v1287_v28 }
 0x315   : > { %v2816_v24 = vpop.eup %2815  ;;  %v1094_v25 = vpop.f32.mrf.mxu1  ;;  %v1668_v29 = vmul.f32 0.5, %v1572_v21 }
 0x316   : > { %v1795_v26 = vmul.f32 0.5, %v2816_v24  ;;  %v1095_v27 = vadd.f32 %v3301_v49, %v1094_v25  ;;  %v3387_v24 = vld [vmem:[%s3484_s3 + $0x2] ss:$0 sm:$0xff] }
 0x317   : > { %v2050_v30 = vpop.f32.mrf.mxu3  ;;  %2819 = vtanh.f32 %v1668_v29 }
 0x318   : > { %v2818_v31 = vpop.eup %2817  ;;  %v1859_v40 = vadd.f32 0.5, %v1795_v26  ;;  %v2051_v33 = vadd.f32 %v3241_v5, %v2050_v30  ;;  %v1161_v35 = vmul.f32 0.5, %v1095_v27 }
 0x319   : > { %v1288_v34 = vmul.f32 0.5, %v2818_v31 }
 0x31a   : > { %2176 = vst [vmem:[%s3255_s18 + $0xb8] sm:$0xff] %v2051_v33  ;;  %v1573_v37 = vpop.f32.mrf.mxu2  ;;  %v1902_v38 = vpack.c.bf16 %v1859_v40, %v1858_v32  ;;  %2821 = vtanh.f32 %v1161_v35 }
 0x31b   : > { %v1352_v41 = vadd.f32 0.5, %v1288_v34  ;;  %v1574_v42 = vadd.f32 %v3267_v44, %v1573_v37 }
 0x31c   : > { %2092 = vmatmul.bf16.gmra.mxu3 %v1902_v38 }
 0x31d   : > { %v1669_v43 = vmul.f32 0.5, %v1574_v42  ;;  %v1096_v45 = vpop.f32.mrf.mxu1  ;;  %v1385_v46 = vpack.c.bf16 %v1352_v41, %v1351_v39  ;;  %v2820_v50 = vpop.eup %2819 }
 0x31e   : > { %v1097_v52 = vadd.f32 %v3301_v49, %v1096_v45  ;;  %v1796_v49 = vmul.f32 0.5, %v2820_v50 }
 0x31f   : > { %2823 = vtanh.f32 %v1669_v43  ;;  %1615 = vmatmul.bf16.gmra.mxu2 %v1385_v46  ;;  %v2053_v5 = vpop.f32.mrf.mxu3 }
 0x320   : > { %v1162_v47 = vmul.f32 0.5, %v1097_v52  ;;  %v2054_v48 = vadd.f32 %v3371_v62, %v2053_v5  ;;  %v2822_v54 = vpop.eup %2821  ;;  %v1860_v61 = vadd.f32 0.5, %v1796_v49 }
 0x321   : > { %v1289_v57 = vmul.f32 0.5, %v2822_v54 }
 0x322   : > { %2825 = vtanh.f32 %v1162_v47  ;;  %2177 = vst [vmem:[%s3255_s18 + $0xc0] sm:$0xff] %v2054_v48  ;;  %v1576_v51 = vpop.f32.mrf.mxu2 }
 0x323   : > { %v1577_v53 = vadd.f32 %v3267_v44, %v1576_v51  ;;  %v1353_v3 = vadd.f32 0.5, %v1289_v57 }
 0x325   : > { %v2824_v55 = vpop.eup %2823  ;;  %v1670_v58 = vmul.f32 0.5, %v1577_v53 }
 0x326   : > { %v1797_v56 = vmul.f32 0.5, %v2824_v55 }
 0x327   : > { %v2055_v59 = vpop.f32.mrf.mxu3  ;;  %2827 = vtanh.f32 %v1670_v58 }
 0x328   : > { %v2826_v60 = vpop.eup %2825  ;;  %v1861_v63 = vadd.f32 0.5, %v1797_v56  ;;  %v2056_v36 = vadd.f32 %v3371_v62, %v2055_v59 }
 0x329   : > { %v1290_v0 = vmul.f32 0.5, %v2826_v60 }
 0x32a   : > { %2178 = vst [vmem:[%s3255_s18 + $0xc8] sm:$0xff] %v2056_v36  ;;  %v1578_v1 = vpop.f32.mrf.mxu2  ;;  %v1903_v2 = vpack.c.bf16 %v1861_v63, %v1860_v61 }
 0x32b   : > { %v1354_v4 = vadd.f32 0.5, %v1290_v0  ;;  %v1579_v7 = vadd.f32 %v3267_v44, %v1578_v1 }
 0x32c   : > { %2097 = vmatmul.bf16.gmra.mxu3 %v1903_v2 }
 0x32d   : > { %v1671_v8 = vmul.f32 0.5, %v1579_v7  ;;  %v1386_v9 = vpack.c.bf16 %v1354_v4, %v1353_v3  ;;  %v2828_v11 = vpop.eup %2827 }
 0x32e   : > { %v1798_v14 = vmul.f32 0.5, %v2828_v11 }
 0x32f   : > { %2829 = vtanh.f32 %v1671_v8  ;;  %1620 = vmatmul.bf16.gmra.mxu2 %v1386_v9  ;;  %v2058_v6 = vpop.f32.mrf.mxu3 }
 0x330   : > { %v2059_v10 = vadd.f32 %v3371_v62, %v2058_v6  ;;  %v1862_v19 = vadd.f32 0.5, %v1798_v14 }
 0x332   : > { %2179 = vst [vmem:[%s3255_s18 + $0xd0] sm:$0xff] %v2059_v10  ;;  %v1581_v12 = vpop.f32.mrf.mxu2 }
 0x333   : > { %v1582_v13 = vadd.f32 %v3267_v44, %v1581_v12 }
 0x335   : > { %v2830_v15 = vpop.eup %2829  ;;  %v1672_v17 = vmul.f32 0.5, %v1582_v13 }
 0x336   : > { %v1799_v16 = vmul.f32 0.5, %v2830_v15 }
 0x337   : > { %v2060_v18 = vpop.f32.mrf.mxu3  ;;  %2831 = vtanh.f32 %v1672_v17 }
 0x338   : > { %v1863_v20 = vadd.f32 0.5, %v1799_v16  ;;  %v2061_v21 = vadd.f32 %v3371_v62, %v2060_v18 }
 0x33a   : > { %2180 = vst [vmem:[%s3255_s18 + $0xd8] sm:$0xff] %v2061_v21  ;;  %v1583_v22 = vpop.f32.mrf.mxu2  ;;  %v1904_v23 = vpack.c.bf16 %v1863_v20, %v1862_v19 }
 0x33b   : > { %v1584_v44 = vadd.f32 %v3387_v24, %v1583_v22 }
 0x33c   : > { %2102 = vmatmul.bf16.gmra.mxu3 %v1904_v23 }
 0x33d   : > { %v1673_v25 = vmul.f32 0.5, %v1584_v44  ;;  %v2832_v28 = vpop.eup %2831 }
 0x33e   : > { %v1800_v31 = vmul.f32 0.5, %v2832_v28 }
 0x33f   : > { %2833 = vtanh.f32 %v1673_v25  ;;  %v2063_v26 = vpop.f32.mrf.mxu3 }
 0x340   : > { %v2064_v27 = vadd.f32 %v3371_v62, %v2063_v26  ;;  %v1864_v35 = vadd.f32 0.5, %v1800_v31 }
 0x342   : > { %2181 = vst [vmem:[%s3255_s18 + $0xe0] sm:$0xff] %v2064_v27  ;;  %v1586_v29 = vpop.f32.mrf.mxu2 }
 0x343   : > { %v1587_v30 = vadd.f32 %v3387_v24, %v1586_v29 }
 0x345   : > { %v2834_v32 = vpop.eup %2833  ;;  %v1674_v33 = vmul.f32 0.5, %v1587_v30 }
 0x346   : > { %v1801_v40 = vmul.f32 0.5, %v2834_v32 }
 0x347   : > { %v2065_v34 = vpop.f32.mrf.mxu3  ;;  %2835 = vtanh.f32 %v1674_v33 }
 0x348   : > { %v1865_v37 = vadd.f32 0.5, %v1801_v40  ;;  %v2066_v38 = vadd.f32 %v3371_v62, %v2065_v34 }
 0x34a   : > { %2182 = vst [vmem:[%s3255_s18 + $0xe8] sm:$0xff] %v2066_v38  ;;  %v1588_v39 = vpop.f32.mrf.mxu2  ;;  %v1905_v41 = vpack.c.bf16 %v1865_v37, %v1864_v35 }
 0x34b   : > { %v1589_v42 = vadd.f32 %v3387_v24, %v1588_v39 }
 0x34c   : > { %2107 = vmatmul.bf16.gmra.mxu3 %v1905_v41 }
 0x34d   : > { %v1675_v43 = vmul.f32 0.5, %v1589_v42  ;;  %v2836_v52 = vpop.eup %2835 }
 0x34e   : > { %v1802_v48 = vmul.f32 0.5, %v2836_v52 }
 0x34f   : > { %2837 = vtanh.f32 %v1675_v43  ;;  %v2068_v45 = vpop.f32.mrf.mxu3 }
 0x350   : > { %v2069_v46 = vadd.f32 %v3371_v62, %v2068_v45  ;;  %v1866_v49 = vadd.f32 0.5, %v1802_v48 }
 0x352   : > { %2183 = vst [vmem:[%s3255_s18 + $0xf0] sm:$0xff] %v2069_v46  ;;  %v1591_v5 = vpop.f32.mrf.mxu2 }
 0x353   : > { %v1592_v47 = vadd.f32 %v3387_v24, %v1591_v5 }
 0x355   : > { %v2838_v50 = vpop.eup %2837  ;;  %v1676_v53 = vmul.f32 0.5, %v1592_v47 }
 0x356   : > { %v1803_v51 = vmul.f32 0.5, %v2838_v50 }
 0x357   : > { %v2070_v54 = vpop.f32.mrf.mxu3  ;;  %2839 = vtanh.f32 %v1676_v53 }
 0x358   : > { %v1867_v55 = vadd.f32 0.5, %v1803_v51  ;;  %v2071_v56 = vadd.f32 %v3371_v62, %v2070_v54 }
 0x35a   : > { %2184 = vst [vmem:[%s3255_s18 + $0xf8] sm:$0xff] %v2071_v56  ;;  %v1593_v57 = vpop.f32.mrf.mxu2  ;;  %v1906_v58 = vpack.c.bf16 %v1867_v55, %v1866_v49 }
 0x35b   : > { %v1594_v59 = vadd.f32 %v3387_v24, %v1593_v57 }
 0x35c   : > { %2112 = vmatmul.bf16.gmra.mxu3 %v1906_v58 }
 0x35d   : > { %v1677_v60 = vmul.f32 0.5, %v1594_v59  ;;  %v2840_v36 = vpop.eup %2839 }
 0x35e   : > { %v1804_v2 = vmul.f32 0.5, %v2840_v36 }
 0x35f   : > { %2841 = vtanh.f32 %v1677_v60  ;;  %v2073_v61 = vpop.f32.mrf.mxu3 }
 0x360   : > { %v2074_v63 = vadd.f32 %v3371_v62, %v2073_v61  ;;  %v1868_v9 = vadd.f32 0.5, %v1804_v2 }
 0x362   : > { %2185 = vst [vmem:[%s3255_s18 + $0x100] sm:$0xff] %v2074_v63  ;;  %v1596_v0 = vpop.f32.mrf.mxu2 }
 0x363   : > { %v1597_v1 = vadd.f32 %v3387_v24, %v1596_v0 }
 0x365   : > { %v2842_v3 = vpop.eup %2841  ;;  %v1678_v7 = vmul.f32 0.5, %v1597_v1 }
 0x366   : > { %v1805_v4 = vmul.f32 0.5, %v2842_v3 }
 0x367   : > { %v2075_v8 = vpop.f32.mrf.mxu3  ;;  %2843 = vtanh.f32 %v1678_v7 }
 0x368   : > { %v1869_v6 = vadd.f32 0.5, %v1805_v4  ;;  %v2076_v10 = vadd.f32 %v3371_v62, %v2075_v8 }
 0x36a   : > { %2186 = vst [vmem:[%s3255_s18 + $0x108] sm:$0xff] %v2076_v10  ;;  %v1598_v11 = vpop.f32.mrf.mxu2  ;;  %v1907_v12 = vpack.c.bf16 %v1869_v6, %v1868_v9 }
 0x36b   : > { %v1599_v13 = vadd.f32 %v3387_v24, %v1598_v11 }
 0x36c   : > { %2117 = vmatmul.bf16.gmra.mxu3 %v1907_v12 }
 0x36d   : > { %v1679_v14 = vmul.f32 0.5, %v1599_v13  ;;  %v2844_v17 = vpop.eup %2843 }
 0x36e   : > { %v1806_v20 = vmul.f32 0.5, %v2844_v17 }
 0x36f   : > { %2845 = vtanh.f32 %v1679_v14  ;;  %v2078_v15 = vpop.f32.mrf.mxu3 }
 0x370   : > { %v2079_v16 = vadd.f32 %v3371_v62, %v2078_v15  ;;  %v1870_v25 = vadd.f32 0.5, %v1806_v20 }
 0x372   : > { %2187 = vst [vmem:[%s3255_s18 + $0x110] sm:$0xff] %v2079_v16  ;;  %v1601_v18 = vpop.f32.mrf.mxu2 }
 0x373   : > { %v1602_v19 = vadd.f32 %v3387_v24, %v1601_v18 }
 0x375   : > { %v2846_v21 = vpop.eup %2845  ;;  %v1680_v23 = vmul.f32 0.5, %v1602_v19 }
 0x376   : > { %v1807_v22 = vmul.f32 0.5, %v2846_v21 }
 0x377   : > { %v2080_v44 = vpop.f32.mrf.mxu3  ;;  %2847 = vtanh.f32 %v1680_v23 }
 0x378   : > { %v1871_v26 = vadd.f32 0.5, %v1807_v22  ;;  %v2081_v27 = vadd.f32 %v3371_v62, %v2080_v44 }
 0x37a   : > { %2188 = vst [vmem:[%s3255_s18 + $0x118] sm:$0xff] %v2081_v27  ;;  %v1603_v28 = vpop.f32.mrf.mxu2  ;;  %v1908_v29 = vpack.c.bf16 %v1871_v26, %v1870_v25 }
 0x37b   : > { %v1604_v30 = vadd.f32 %v3387_v24, %v1603_v28 }
 0x37c   : > { %2122 = vmatmul.bf16.gmra.mxu3 %v1908_v29 }
 0x37d   : > { %v1681_v31 = vmul.f32 0.5, %v1604_v30  ;;  %v2848_v33 = vpop.eup %2847 }
 0x37e   : > { %v1808_v37 = vmul.f32 0.5, %v2848_v33 }
 0x37f   : > { %2849 = vtanh.f32 %v1681_v31  ;;  %v2083_v32 = vpop.f32.mrf.mxu3 }
 0x380   : > { %v2084_v40 = vadd.f32 %v3371_v62, %v2083_v32  ;;  %v1872_v43 = vadd.f32 0.5, %v1808_v37 }
 0x382   : > { %2189 = vst [vmem:[%s3255_s18 + $0x120] sm:$0xff] %v2084_v40  ;;  %v1606_v34 = vpop.f32.mrf.mxu2 }
 0x383   : > { %v1607_v35 = vadd.f32 %v3387_v24, %v1606_v34 }
 0x385   : > { %v2850_v38 = vpop.eup %2849  ;;  %v1682_v41 = vmul.f32 0.5, %v1607_v35 }
 0x386   : > { %v1809_v39 = vmul.f32 0.5, %v2850_v38 }
 0x387   : > { %v2085_v42 = vpop.f32.mrf.mxu3  ;;  %2851 = vtanh.f32 %v1682_v41 }
 0x388   : > { %v1873_v45 = vadd.f32 0.5, %v1809_v39  ;;  %v2086_v46 = vadd.f32 %v3371_v62, %v2085_v42 }
 0x38a   : > { %2190 = vst [vmem:[%s3255_s18 + $0x128] sm:$0xff] %v2086_v46  ;;  %v1608_v52 = vpop.f32.mrf.mxu2  ;;  %v1909_v5 = vpack.c.bf16 %v1873_v45, %v1872_v43 }
 0x38b   : > { %v1609_v47 = vadd.f32 %v3387_v24, %v1608_v52 }
 0x38c   : > { %2127 = vmatmul.bf16.gmra.mxu3 %v1909_v5 }
 0x38d   : > { %v1683_v48 = vmul.f32 0.5, %v1609_v47  ;;  %v2852_v53 = vpop.eup %2851 }
 0x38e   : > { %v1810_v55 = vmul.f32 0.5, %v2852_v53 }
 0x38f   : > { %2853 = vtanh.f32 %v1683_v48  ;;  %v2088_v50 = vpop.f32.mrf.mxu3 }
 0x390   : > { %v2089_v51 = vadd.f32 %v3371_v62, %v2088_v50  ;;  %v1874_v60 = vadd.f32 0.5, %v1810_v55 }
 0x392   : > { %2191 = vst [vmem:[%s3255_s18 + $0x130] sm:$0xff] %v2089_v51  ;;  %v1611_v54 = vpop.f32.mrf.mxu2 }
 0x393   : > { %v1612_v49 = vadd.f32 %v3387_v24, %v1611_v54 }
 0x395   : > { %v2854_v56 = vpop.eup %2853  ;;  %v1684_v58 = vmul.f32 0.5, %v1612_v49 }
 0x396   : > { %v1811_v57 = vmul.f32 0.5, %v2854_v56 }
 0x397   : > { %v2090_v59 = vpop.f32.mrf.mxu3  ;;  %2855 = vtanh.f32 %v1684_v58 }
 0x398   : > { %v1875_v61 = vadd.f32 0.5, %v1811_v57  ;;  %v2091_v63 = vadd.f32 %v3371_v62, %v2090_v59 }
 0x39a   : > { %2192 = vst [vmem:[%s3255_s18 + $0x138] sm:$0xff] %v2091_v63  ;;  %v1613_v36 = vpop.f32.mrf.mxu2  ;;  %v1910_v0 = vpack.c.bf16 %v1875_v61, %v1874_v60 }
 0x39b   : > { %v1614_v1 = vadd.f32 %v3387_v24, %v1613_v36 }
 0x39c   : > { %2132 = vmatmul.bf16.gmra.mxu3 %v1910_v0 }
 0x39d   : > { %v1685_v2 = vmul.f32 0.5, %v1614_v1  ;;  %v2856_v7 = vpop.eup %2855 }
 0x39e   : > { %v1812_v6 = vmul.f32 0.5, %v2856_v7 }
 0x39f   : > { %2857 = vtanh.f32 %v1685_v2  ;;  %v2093_v3 = vpop.f32.mrf.mxu3 }
 0x3a0   : > { %v2094_v4 = vadd.f32 %v3371_v62, %v2093_v3  ;;  %v1876_v14 = vadd.f32 0.5, %v1812_v6 }
 0x3a2   : > { %2193 = vst [vmem:[%s3255_s18 + $0x140] sm:$0xff] %v2094_v4  ;;  %v1616_v8 = vpop.f32.mrf.mxu2 }
 0x3a3   : > { %v1617_v9 = vadd.f32 %v3387_v24, %v1616_v8 }
 0x3a5   : > { %v2858_v10 = vpop.eup %2857  ;;  %v1686_v12 = vmul.f32 0.5, %v1617_v9 }
 0x3a6   : > { %v1813_v11 = vmul.f32 0.5, %v2858_v10 }
 0x3a7   : > { %v2095_v13 = vpop.f32.mrf.mxu3  ;;  %2859 = vtanh.f32 %v1686_v12 }
 0x3a8   : > { %v1877_v15 = vadd.f32 0.5, %v1813_v11  ;;  %v2096_v16 = vadd.f32 %v3371_v62, %v2095_v13 }
 0x3aa   : > { %2194 = vst [vmem:[%s3255_s18 + $0x148] sm:$0xff] %v2096_v16  ;;  %v1618_v17 = vpop.f32.mrf.mxu2  ;;  %v1911_v18 = vpack.c.bf16 %v1877_v15, %v1876_v14 }
 0x3ab   : > { %v1619_v19 = vadd.f32 %v3387_v24, %v1618_v17 }
 0x3ac   : > { %2137 = vmatmul.bf16.gmra.mxu3 %v1911_v18 }
 0x3ad   : > { %v1687_v20 = vmul.f32 0.5, %v1619_v19  ;;  %v2860_v23 = vpop.eup %2859 }
 0x3ae   : > { %v1814_v26 = vmul.f32 0.5, %v2860_v23 }
 0x3af   : > { %2861 = vtanh.f32 %v1687_v20  ;;  %v2098_v21 = vpop.f32.mrf.mxu3 }
 0x3b0   : > { %v2099_v22 = vadd.f32 %v3371_v62, %v2098_v21  ;;  %v1878_v31 = vadd.f32 0.5, %v1814_v26 }
 0x3b2   : > { %2195 = vst [vmem:[%s3255_s18 + $0x150] sm:$0xff] %v2099_v22  ;;  %v1621_v44 = vpop.f32.mrf.mxu2 }
 0x3b3   : > { %v1622_v25 = vadd.f32 %v3387_v24, %v1621_v44 }
 0x3b5   : > { %v2862_v27 = vpop.eup %2861  ;;  %v1688_v29 = vmul.f32 0.5, %v1622_v25 }
 0x3b6   : > { %v1815_v28 = vmul.f32 0.5, %v2862_v27 }
 0x3b7   : > { %v2100_v30 = vpop.f32.mrf.mxu3  ;;  %2863 = vtanh.f32 %v1688_v29 }
 0x3b8   : > { %v1879_v32 = vadd.f32 0.5, %v1815_v28  ;;  %v2101_v40 = vadd.f32 %v3371_v62, %v2100_v30 }
 0x3ba   : > { %2196 = vst [vmem:[%s3255_s18 + $0x158] sm:$0xff] %v2101_v40  ;;  %v1623_v33 = vpop.f32.mrf.mxu2  ;;  %v1912_v34 = vpack.c.bf16 %v1879_v32, %v1878_v31 }
 0x3bb   : > { %v1624_v35 = vadd.f32 %v3387_v24, %v1623_v33 }
 0x3bc   : > { %2142 = vmatmul.bf16.gmra.mxu3 %v1912_v34 }
 0x3bd   : > { %v1689_v37 = vmul.f32 0.5, %v1624_v35  ;;  %v2864_v41 = vpop.eup %2863 }
 0x3be   : > { %v1816_v42 = vmul.f32 0.5, %v2864_v41 }
 0x3bf   : > { %2865 = vtanh.f32 %v1689_v37  ;;  %v2103_v38 = vpop.f32.mrf.mxu3 }
 0x3c0   : > { %v2104_v39 = vadd.f32 %v3371_v62, %v2103_v38  ;;  %v1880_v52 = vadd.f32 0.5, %v1816_v42 }
 0x3c2   : > { %2197 = vst [vmem:[%s3255_s18 + $0x160] sm:$0xff] %v2104_v39 }
 0x3c5   : > { %v2866_v43 = vpop.eup %2865 }
 0x3c6   : > { %v1817_v45 = vmul.f32 0.5, %v2866_v43 }
 0x3c7   : > { %v2105_v46 = vpop.f32.mrf.mxu3 }
 0x3c8   : > { %v1881_v5 = vadd.f32 0.5, %v1817_v45  ;;  %v2106_v24 = vadd.f32 %v3371_v62, %v2105_v46 }
 0x3ca   : > { %2198 = vst [vmem:[%s3255_s18 + $0x168] sm:$0xff] %v2106_v24  ;;  %v1913_v47 = vpack.c.bf16 %v1881_v5, %v1880_v52 }
 0x3cc   : > { %2147 = vmatmul.bf16.gmra.mxu3 %v1913_v47 }
 0x3cf   : > { %v2108_v48 = vpop.f32.mrf.mxu3 }
 0x3d0   : > { %v2109_v50 = vadd.f32 %v3371_v62, %v2108_v48 }
 0x3d2   : > { %2199 = vst [vmem:[%s3255_s18 + $0x170] sm:$0xff] %v2109_v50 }
 0x3d7   : > { %v2110_v51 = vpop.f32.mrf.mxu3 }
 0x3d8   : > { %v2111_v53 = vadd.f32 %v3371_v62, %v2110_v51 }
 0x3da   : > { %2200 = vst [vmem:[%s3255_s18 + $0x178] sm:$0xff] %v2111_v53 }
 0x3df   : > { %v2113_v54 = vpop.f32.mrf.mxu3 }
 0x3e0   : > { %v2114_v49 = vadd.f32 %v3371_v62, %v2113_v54 }
 0x3e2   : > { %2201 = vst [vmem:[%s3255_s18 + $0x180] sm:$0xff] %v2114_v49 }
 0x3e7   : > { %v2115_v55 = vpop.f32.mrf.mxu3 }
 0x3e8   : > { %v2116_v56 = vadd.f32 %v3371_v62, %v2115_v55 }
 0x3ea   : > { %2202 = vst [vmem:[%s3255_s18 + $0x188] sm:$0xff] %v2116_v56 }
 0x3ef   : > { %v2118_v57 = vpop.f32.mrf.mxu3 }
 0x3f0   : > { %v2119_v58 = vadd.f32 %v3371_v62, %v2118_v57 }
 0x3f2   : > { %2203 = vst [vmem:[%s3255_s18 + $0x190] sm:$0xff] %v2119_v58 }
 0x3f7   : > { %v2120_v59 = vpop.f32.mrf.mxu3 }
 0x3f8   : > { %v2121_v60 = vadd.f32 %v3371_v62, %v2120_v59 }
 0x3fa   : > { %2204 = vst [vmem:[%s3255_s18 + $0x198] sm:$0xff] %v2121_v60 }
 0x3ff   : > { %v2123_v61 = vpop.f32.mrf.mxu3 }
 0x400   : > { %v2124_v63 = vadd.f32 %v3371_v62, %v2123_v61 }
 0x402   : > { %2205 = vst [vmem:[%s3255_s18 + $0x1a0] sm:$0xff] %v2124_v63 }
 0x407   : > { %v2125_v36 = vpop.f32.mrf.mxu3 }
 0x408   : > { %v2126_v0 = vadd.f32 %v3371_v62, %v2125_v36 }
 0x40a   : > { %2206 = vst [vmem:[%s3255_s18 + $0x1a8] sm:$0xff] %v2126_v0 }
 0x40f   : > { %v2128_v1 = vpop.f32.mrf.mxu3 }
 0x410   : > { %v2129_v2 = vadd.f32 %v3371_v62, %v2128_v1 }
 0x412   : > { %2207 = vst [vmem:[%s3255_s18 + $0x1b0] sm:$0xff] %v2129_v2 }
 0x417   : > { %v2130_v3 = vpop.f32.mrf.mxu3 }
 0x418   : > { %v2131_v4 = vadd.f32 %v3371_v62, %v2130_v3 }
 0x41a   : > { %2208 = vst [vmem:[%s3255_s18 + $0x1b8] sm:$0xff] %v2131_v4 }
 0x41f   : > { %v2133_v7 = vpop.f32.mrf.mxu3 }
 0x420   : > { %v2134_v8 = vadd.f32 %v3371_v62, %v2133_v7 }
 0x422   : > { %2209 = vst [vmem:[%s3255_s18 + $0x1c0] sm:$0xff] %v2134_v8 }
 0x427   : > { %v2135_v9 = vpop.f32.mrf.mxu3 }
 0x428   : > { %v2136_v6 = vadd.f32 %v3371_v62, %v2135_v9 }
 0x42a   : > { %2210 = vst [vmem:[%s3255_s18 + $0x1c8] sm:$0xff] %v2136_v6 }
 0x42f   : > { %v2138_v10 = vpop.f32.mrf.mxu3 }
 0x430   : > { %v2139_v11 = vadd.f32 %v3371_v62, %v2138_v10 }
 0x432   : > { %2211 = vst [vmem:[%s3255_s18 + $0x1d0] sm:$0xff] %v2139_v11 }
 0x437   : > { %v2140_v12 = vpop.f32.mrf.mxu3 }
 0x438   : > { %v2141_v13 = vadd.f32 %v3371_v62, %v2140_v12 }
 0x43a   : > { %2212 = vst [vmem:[%s3255_s18 + $0x1d8] sm:$0xff] %v2141_v13 }
 0x43f   : > { %v2143_v14 = vpop.f32.mrf.mxu3 }
 0x440   : > { %v2144_v15 = vadd.f32 %v3371_v62, %v2143_v14 }
 0x442   : > { %2213 = vst [vmem:[%s3255_s18 + $0x1e0] sm:$0xff] %v2144_v15 }
 0x447   : > { %v2145_v16 = vpop.f32.mrf.mxu3 }
 0x448   : > { %v2146_v17 = vadd.f32 %v3371_v62, %v2145_v16 }
 0x44a   : > { %2214 = vst [vmem:[%s3255_s18 + $0x1e8] sm:$0xff] %v2146_v17 }
 0x44f   : > { %v2148_v18 = vpop.f32.mrf.mxu3 }
 0x450   : > { %v2149_v19 = vadd.f32 %v3371_v62, %v2148_v18 }
 0x452   : > { %2215 = vst [vmem:[%s3255_s18 + $0x1f0] sm:$0xff] %v2149_v19 }
 0x457   : > { %v2150_v20 = vpop.f32.mrf.mxu3 }
 0x458   : > { %v2151_v21 = vadd.f32 %v3371_v62, %v2150_v20 }
 0x45a   : > { %2216 = vst [vmem:[%s3255_s18 + $0x1f8] sm:$0xff] %v2151_v21 }
 0x45b PF: > { %s14_s15 = sadd.s32 1, %s2880_s15  }
 0x45c   : > { %p11_p4 = scmp.ge.s32.totalorder %s14_s15, 4  }
 0x45e   :  { %13 = sbr.rel (!%p11_p4) target bundleno = 1 (0x1), region = 71 }

</bundles_post_ra>
